<compile_context>
chip_gen: v5e
topology: v5e:2x2
jax: 0.10.0
libtpu: 0.0.40
codegen_flags: <defaults>
</compile_context>

<pallas_src>
import functools

import jax
import jax.numpy as jnp
from jax import lax
from jax.experimental import pallas as pl
from jax.experimental.pallas import tpu as pltpu

EPS = 1e-5
LANE = 128
_MIB = 1024 * 1024


def _round_up(x, m):
    return (x + m - 1) // m * m


def _compiler_params(block_bytes):
    """Parallel 1-D grid; raise the VMEM budget only when double-buffered
    blocks would exceed the 32 MiB scoped default (cap 64 MiB: v7x physical)."""
    est = int(2.5 * sum(block_bytes))  # 2x double-buffer + 25% headroom
    kwargs = {}
    if est > 32 * _MIB:
        kwargs["vmem_limit_bytes"] = min(est, 64 * _MIB)
    return pltpu.CompilerParams(dimension_semantics=("parallel",), **kwargs)


def _pick_tile_n(n, tile_n):
    """>=2 grid steps whenever possible (megacore / v7x 2 TCs), 128-row granule."""
    cap = max(128, _round_up(-(-n // 2), 128))
    return max(128, min(_round_up(tile_n, 128), cap))


def _pick_pass3_tile(num_tiles, tile_n, cap=2048):
    """Largest multiple of tile_n that divides n_p, fits `cap` rows, and keeps
    >=2 grid steps when possible (pass 3 is purely mem-bound)."""
    best = tile_n
    for k in range(num_tiles, 0, -1):
        if num_tiles % k:
            continue
        if k * tile_n > cap:
            continue
        if num_tiles // k >= 2 or num_tiles == 1:
            best = k * tile_n
            break
    return best


def _write_stats(stats_ref, z):
    # Rows 0/1 of the (8, D) stats block carry sum / sum-of-squares; rows 2..7
    # are never read by the reducer and are left untouched.
    stats_ref[0:1, :] = jnp.sum(z, axis=0, keepdims=True)
    stats_ref[1:2, :] = jnp.sum(z * z, axis=0, keepdims=True)


# --------- pass 1: z1 = h @ W1 (bf16 MXU, f32 acc) + per-tile stats ----------
def _matmul_stats_kernel(x_ref, w_ref, z_ref, stats_ref):
    x = x_ref[...].astype(jnp.bfloat16)  # in-kernel cast: free VPU filler
    z = jnp.dot(x, w_ref[...], preferred_element_type=jnp.float32)
    z_ref[...] = z.astype(z_ref.dtype)
    # Zero-padded rows of h contribute exactly 0 to z (no bias), so no row mask
    # is needed here; the wrapper divides the totals by the true N.
    _write_stats(stats_ref, z)


# --- pass 2: a1 = relu(bn1(z1)); z2 = a1 @ W2 + per-tile stats of z2 ---------
def _bn_relu_matmul_stats_kernel(z1_ref, scale_ref, shift_ref, w_ref,
                                 z2_ref, stats_ref, *, rows_in_last_tile):
    z1 = z1_ref[...].astype(jnp.float32)
    a1 = jnp.maximum(z1 * scale_ref[...] + shift_ref[...], 0.0)
    z2 = jnp.dot(a1.astype(jnp.bfloat16), w_ref[...],
                 preferred_element_type=jnp.float32)
    z2_ref[...] = z2.astype(z2_ref.dtype)
    _write_stats(stats_ref, z2)

    if rows_in_last_tile is not None:
        # Only the last tile holds padded rows; re-derive its stats with the
        # padded rows masked out. (Padded z2 rows themselves are sliced away
        # later, so only the statistics need the mask.)
        @pl.when(pl.program_id(0) == pl.num_programs(0) - 1)
        def _():
            rows = lax.broadcasted_iota(jnp.int32, z2.shape, 0)
            z2m = jnp.where(rows < rows_in_last_tile, z2, 0.0)
            _write_stats(stats_ref, z2m)


# ---------------- pass 3: out = relu(bn2(z2)) --------------------------------
def _bn_relu_kernel(z2_ref, scale_ref, shift_ref, o_ref):
    z2 = z2_ref[...].astype(jnp.float32)
    o_ref[...] = jnp.maximum(z2 * scale_ref[...] + shift_ref[...],
                             0.0).astype(o_ref.dtype)


def _stats_to_scale_shift(stats, n, gamma, beta):
    """Reduce per-tile (sum, sumsq) partials -> BN scale/shift vectors (f32)."""
    st = stats.reshape(-1, 8, stats.shape[-1])
    total = jnp.sum(st[:, 0, :], axis=0)
    total_sq = jnp.sum(st[:, 1, :], axis=0)
    mean = total / n
    # One-pass E[x^2]-E[x]^2 in f32, clamped at 0 (biased, training-mode var).
    var = jnp.maximum(total_sq / n - mean * mean, 0.0)
    scale = gamma * lax.rsqrt(var + EPS)
    shift = beta - mean * scale
    return (scale.reshape(1, -1).astype(jnp.float32),
            shift.reshape(1, -1).astype(jnp.float32))


@functools.partial(jax.jit, static_argnames=("tile_n",))
def apply_node_func(h, params, *, tile_n=512):
    """h: [N, input_dim] node features. Returns [N, output_dim] (h.dtype)."""
    n, d_in = h.shape
    h_dim = params["w1"].shape[1]
    out_dim = params["w2"].shape[1]

    d_in_p = _round_up(d_in, LANE)
    h_dim_p = _round_up(h_dim, LANE)
    out_dim_p = _round_up(out_dim, LANE)

    tile_n = _pick_tile_n(n, tile_n)
    n_p = _round_up(n, tile_n)
    num_tiles = n_p // tile_n
    tile_n3 = _pick_pass3_tile(num_tiles, tile_n)
    num_tiles3 = n_p // tile_n3

    # ---- operand prep -------------------------------------------------------
    # Materialize a padded/casted copy of h only when padding is required;
    # otherwise feed f32 h straight in (cast to bf16 happens inside the kernel).
    if n_p != n or d_in_p != d_in:
        hp = jnp.zeros((n_p, d_in_p), jnp.bfloat16).at[:n, :d_in].set(
            h.astype(jnp.bfloat16))
    else:
        hp = h
    w1 = jnp.zeros((d_in_p, h_dim_p), jnp.bfloat16).at[:d_in, :h_dim].set(
        params["w1"].astype(jnp.bfloat16))
    w2 = jnp.zeros((h_dim_p, out_dim_p), jnp.bfloat16).at[:h_dim, :out_dim].set(
        params["w2"].astype(jnp.bfloat16))
    g1 = jnp.zeros((h_dim_p,), jnp.float32).at[:h_dim].set(params["g1"].reshape(-1))
    be1 = jnp.zeros((h_dim_p,), jnp.float32).at[:h_dim].set(params["be1"].reshape(-1))
    g2 = jnp.zeros((out_dim_p,), jnp.float32).at[:out_dim].set(params["g2"].reshape(-1))
    be2 = jnp.zeros((out_dim_p,), jnp.float32).at[:out_dim].set(params["be2"].reshape(-1))
    # Pre-BN Linear biases b1/b2 intentionally unused: BatchNorm's mean
    # subtraction cancels any per-feature constant added before it.

    nf = jnp.float32(n)
    x_bytes = hp.dtype.itemsize

    # -------------------- pass 1: z1 = h @ W1 + stats(z1) --------------------
    cp1 = _compiler_params([
        tile_n * d_in_p * x_bytes,
        d_in_p * h_dim_p * 2,
        tile_n * h_dim_p * 2,
        8 * h_dim_p * 4,
    ])
    z1, st1 = pl.pallas_call(
        _matmul_stats_kernel,
        grid=(num_tiles,),
        in_specs=[
            pl.BlockSpec((tile_n, d_in_p), lambda i: (i, 0)),
            pl.BlockSpec((d_in_p, h_dim_p), lambda i: (0, 0)),     # resident W1
        ],
        out_specs=[
            pl.BlockSpec((tile_n, h_dim_p), lambda i: (i, 0)),
            pl.BlockSpec((8, h_dim_p), lambda i: (i, 0)),
        ],
        out_shape=[
            jax.ShapeDtypeStruct((n_p, h_dim_p), jnp.bfloat16),
            jax.ShapeDtypeStruct((8 * num_tiles, h_dim_p), jnp.float32),
        ],
        compiler_params=cp1,
    )(hp, w1)
    scale1, shift1 = _stats_to_scale_shift(st1, nf, g1, be1)

    # ---------- pass 2: a1 = relu(bn1(z1)); z2 = a1 @ W2 + stats(z2) ---------
    rows_in_last = (n - (num_tiles - 1) * tile_n) if n_p != n else None
    kernel2 = functools.partial(_bn_relu_matmul_stats_kernel,
                                rows_in_last_tile=rows_in_last)
    cp2 = _compiler_params([
        tile_n * h_dim_p * 2,
        2 * h_dim_p * 4,
        h_dim_p * out_dim_p * 2,
        tile_n * out_dim_p * 2,
        8 * out_dim_p * 4,
    ])
    z2, st2 = pl.pallas_call(
        kernel2,
        grid=(num_tiles,),
        in_specs=[
            pl.BlockSpec((tile_n, h_dim_p), lambda i: (i, 0)),
            pl.BlockSpec((1, h_dim_p), lambda i: (0, 0)),
            pl.BlockSpec((1, h_dim_p), lambda i: (0, 0)),
            pl.BlockSpec((h_dim_p, out_dim_p), lambda i: (0, 0)),  # resident W2
        ],
        out_specs=[
            pl.BlockSpec((tile_n, out_dim_p), lambda i: (i, 0)),
            pl.BlockSpec((8, out_dim_p), lambda i: (i, 0)),
        ],
        out_shape=[
            jax.ShapeDtypeStruct((n_p, out_dim_p), jnp.bfloat16),
            jax.ShapeDtypeStruct((8 * num_tiles, out_dim_p), jnp.float32),
        ],
        compiler_params=cp2,
    )(z1, scale1, shift1, w2)
    scale2, shift2 = _stats_to_scale_shift(st2, nf, g2, be2)

    # -------------------- pass 3: out = relu(bn2(z2)) ------------------------
    aligned_out = (n_p == n) and (out_dim_p == out_dim)
    out_rows = n if aligned_out else n_p
    out_cols = out_dim if aligned_out else out_dim_p
    cp3 = _compiler_params([
        tile_n3 * out_dim_p * 2,
        2 * out_dim_p * 4,
        tile_n3 * out_cols * jnp.dtype(h.dtype).itemsize,
    ])
    out = pl.pallas_call(
        _bn_relu_kernel,
        grid=(num_tiles3,),
        in_specs=[
            pl.BlockSpec((tile_n3, out_dim_p), lambda i: (i, 0)),
            pl.BlockSpec((1, out_dim_p), lambda i: (0, 0)),
            pl.BlockSpec((1, out_dim_p), lambda i: (0, 0)),
        ],
        out_specs=pl.BlockSpec((tile_n3, out_cols), lambda i: (i, 0)),
        out_shape=jax.ShapeDtypeStruct((out_rows, out_cols), h.dtype),
        compiler_params=cp3,
    )(z2, scale2, shift2)

    if aligned_out:
        return out           # no extra HBM slice copy on aligned shapes
    return out[:n, :out_dim]


def init_params(key, input_dim, hidden_dim, output_dim):
    """Deterministic synthetic parameters; Linear weights stored as (in, out)."""
    k1, k2, k3, k4 = jax.random.split(key, 4)

    def linear_init(k, fan_in, fan_out):
        bound = 1.0 / jnp.sqrt(fan_in)
        kw, kb = jax.random.split(k)
        w = jax.random.uniform(kw, (fan_in, fan_out), jnp.float32, -bound, bound)
        b = jax.random.uniform(kb, (1, fan_out), jnp.float32, -bound, bound)
        return w, b

    w1, b1 = linear_init(k1, input_dim, hidden_dim)
    w2, b2 = linear_init(k2, hidden_dim, output_dim)
    g1 = 1.0 + 0.01 * jax.random.normal(k3, (1, hidden_dim), jnp.float32)
    be1 = jnp.zeros((1, hidden_dim), jnp.float32)
    g2 = 1.0 + 0.01 * jax.random.normal(k4, (1, output_dim), jnp.float32)
    be2 = jnp.zeros((1, output_dim), jnp.float32)
    return dict(w1=w1, b1=b1, g1=g1, be1=be1, w2=w2, b2=b2, g2=g2, be2=be2)


def apply_node_func_ref(h, p):
    """Pure-JAX f32 reference (includes the b1/b2 biases, which BN cancels)."""
    z1 = h @ p["w1"] + p["b1"]
    m1 = z1.mean(0, keepdims=True)
    v1 = ((z1 - m1) ** 2).mean(0, keepdims=True)
    a1 = jnp.maximum((z1 - m1) / jnp.sqrt(v1 + EPS) * p["g1"] + p["be1"], 0.0)
    z2 = a1 @ p["w2"] + p["b2"]
    m2 = z2.mean(0, keepdims=True)
    v2 = ((z2 - m2) ** 2).mean(0, keepdims=True)
    return jnp.maximum((z2 - m2) / jnp.sqrt(v2 + EPS) * p["g2"] + p["be2"], 0.0)


if __name__ == "__main__":
    key = jax.random.PRNGKey(0)

    # Config 1: non-aligned shapes -> exercises feature padding, row padding
    #           and the pl.when-gated last-tile stats mask.
    # Config 2: lane/tile-aligned shapes -> exercises the no-pad fast path
    #           (f32 h fed directly, exact-shape pass-3 output, no final slice).
    configs = [
        (300, 48, 64, 32, 256),
        (512, 128, 128, 128, 512),
    ]
    for idx, (N, DI, DH, DO, tn) in enumerate(configs):
        k_h, k_p = jax.random.split(jax.random.fold_in(key, idx))
        h = jax.random.normal(k_h, (N, DI), jnp.float32)
        params = init_params(k_p, DI, DH, DO)

        out = jax.block_until_ready(apply_node_func(h, params, tile_n=tn))
        ref = apply_node_func_ref(h, params)

        assert out.shape == (N, DO)
        assert bool(jnp.all(jnp.isfinite(out)))
        err = jnp.abs(out - ref)
        # bf16 matmul operands + bf16 intermediates -> small drift vs f32 ref.
        assert float(err.max()) < 1e-1 and float(err.mean()) < 2e-2, (
            idx, float(err.max()), float(err.mean()))

    print("KERNEL_OK")
</pallas_src>

<mosaic_0001>
module attributes {stable_mosaic.version = 11 : i64} {
  func.func @_bn_relu_matmul_stats_kernel(%arg0: i32, %arg1: memref<256x128xbf16, #tpu.memory_space<vmem>>, %arg2: memref<1x128xf32, #tpu.memory_space<vmem>>, %arg3: memref<1x128xf32, #tpu.memory_space<vmem>>, %arg4: memref<128x128xbf16, #tpu.memory_space<vmem>>, %arg5: memref<256x128xbf16, #tpu.memory_space<vmem>>, %arg6: memref<8x128xf32, #tpu.memory_space<vmem>>) attributes {dimension_semantics = [#tpu.dimension_semantics<parallel>], iteration_bounds = array<i64: 2>, scalar_prefetch = 0 : i64, scratch_operands = 0 : i64, tpu.core_type = #tpu.core_type<tc>, window_params = [{transform_indices = @transform_0, window_bounds = array<i64: 256, 128>}, {pipeline_mode = #tpu.pipeline_mode<synchronous>, transform_indices = @transform_1, window_bounds = array<i64: 1, 128>}, {pipeline_mode = #tpu.pipeline_mode<synchronous>, transform_indices = @transform_2, window_bounds = array<i64: 1, 128>}, {pipeline_mode = #tpu.pipeline_mode<synchronous>, transform_indices = @transform_3, window_bounds = array<i64: 128, 128>}, {transform_indices = @transform_4, window_bounds = array<i64: 256, 128>}, {transform_indices = @transform_5, window_bounds = array<i64: 8, 128>}]} {
    %c0 = arith.constant 0 : index
    %c0_0 = arith.constant 0 : index
    %0 = vector.load %arg1[%c0, %c0_0] : memref<256x128xbf16, #tpu.memory_space<vmem>>, vector<256x128xbf16>
    %1 = arith.extf %0 : vector<256x128xbf16> to vector<256x128xf32>
    %c0_1 = arith.constant 0 : index
    %c0_2 = arith.constant 0 : index
    %2 = vector.load %arg2[%c0_1, %c0_2] : memref<1x128xf32, #tpu.memory_space<vmem>>, vector<1x128xf32>
    %3 = vector.broadcast %2 : vector<1x128xf32> to vector<256x128xf32>
    %4 = arith.mulf %1, %3 : vector<256x128xf32>
    %c0_3 = arith.constant 0 : index
    %c0_4 = arith.constant 0 : index
    %5 = vector.load %arg3[%c0_3, %c0_4] : memref<1x128xf32, #tpu.memory_space<vmem>>, vector<1x128xf32>
    %6 = vector.broadcast %5 : vector<1x128xf32> to vector<256x128xf32>
    %7 = arith.addf %4, %6 : vector<256x128xf32>
    %cst = arith.constant 0.000000e+00 : f32
    %8 = vector.broadcast %cst : f32 to vector<256x128xf32>
    %9 = arith.maximumf %7, %8 : vector<256x128xf32>
    %10 = arith.truncf %9 : vector<256x128xf32> to vector<256x128xbf16>
    %c0_5 = arith.constant 0 : index
    %c0_6 = arith.constant 0 : index
    %11 = vector.load %arg4[%c0_5, %c0_6] : memref<128x128xbf16, #tpu.memory_space<vmem>>, vector<128x128xbf16>
    %cst_7 = arith.constant dense<0.000000e+00> : vector<256x128xf32>
    %12 = tpu.matmul %10, %11, %cst_7 {dimension_numbers = #tpu.dot_dimension_numbers<[1], [0], [0], [1], [0, 0, 1, 1], [], []>} : vector<256x128xbf16>, vector<128x128xbf16>, vector<256x128xf32> -> vector<256x128xf32>
    %13 = arith.truncf %12 : vector<256x128xf32> to vector<256x128xbf16>
    %c0_8 = arith.constant 0 : index
    %c0_9 = arith.constant 0 : index
    %14 = vector.load %arg5[%c0_8, %c0_9] : memref<256x128xbf16, #tpu.memory_space<vmem>>, vector<256x128xbf16>
    tpu.vector_store %arg5[%c0_8, %c0_9], %13 {strides = array<i32>} : memref<256x128xbf16, #tpu.memory_space<vmem>>, vector<256x128xbf16>,
    %cst_10 = arith.constant dense<0.000000e+00> : vector<128xf32>
    %15 = vector.multi_reduction <add>, %12, %cst_10 [0] : vector<256x128xf32> to vector<128xf32>
    %16 = vector.shape_cast %15 : vector<128xf32> to vector<1x128xf32>
    %c0_11 = arith.constant 0 : index
    %c0_12 = arith.constant 0 : index
    %17 = vector.load %arg6[%c0_11, %c0_12] : memref<8x128xf32, #tpu.memory_space<vmem>>, vector<1x128xf32>
    tpu.vector_store %arg6[%c0_11, %c0_12], %16 {strides = array<i32>} : memref<8x128xf32, #tpu.memory_space<vmem>>, vector<1x128xf32>,
    %18 = arith.mulf %12, %12 : vector<256x128xf32>
    %cst_13 = arith.constant dense<0.000000e+00> : vector<128xf32>
    %19 = vector.multi_reduction <add>, %18, %cst_13 [0] : vector<256x128xf32> to vector<128xf32>
    %20 = vector.shape_cast %19 : vector<128xf32> to vector<1x128xf32>
    %c1 = arith.constant 1 : index
    %c0_14 = arith.constant 0 : index
    %21 = vector.load %arg6[%c1, %c0_14] : memref<8x128xf32, #tpu.memory_space<vmem>>, vector<1x128xf32>
    tpu.vector_store %arg6[%c1, %c0_14], %20 {strides = array<i32>} : memref<8x128xf32, #tpu.memory_space<vmem>>, vector<1x128xf32>,
    %c1_i32 = arith.constant 1 : i32
    %22 = arith.cmpi eq, %arg0, %c1_i32 : i32
    %23 = arith.extui %22 : i1 to i32
    %c0_i32 = arith.constant 0 : i32
    %24 = arith.cmpi ne, %23, %c0_i32 : i32
    scf.if %24 {
      %25 = tpu.iota {dimensions = array<i32: 0>} : vector<256x128xi32>
      %c44_i32 = arith.constant 44 : i32
      %26 = vector.broadcast %c44_i32 : i32 to vector<256x128xi32>
      %27 = arith.cmpi slt, %25, %26 : vector<256x128xi32>
      %cst_15 = arith.constant 0.000000e+00 : f32
      %28 = vector.broadcast %cst_15 : f32 to vector<256x128xf32>
      %29 = arith.select %27, %12, %28 : vector<256x128xi1>, vector<256x128xf32>
      %cst_16 = arith.constant dense<0.000000e+00> : vector<128xf32>
      %30 = vector.multi_reduction <add>, %29, %cst_16 [0] : vector<256x128xf32> to vector<128xf32>
      %31 = vector.shape_cast %30 : vector<128xf32> to vector<1x128xf32>
      %c0_17 = arith.constant 0 : index
      %c0_18 = arith.constant 0 : index
      %32 = vector.load %arg6[%c0_17, %c0_18] : memref<8x128xf32, #tpu.memory_space<vmem>>, vector<1x128xf32>
      tpu.vector_store %arg6[%c0_17, %c0_18], %31 {strides = array<i32>} : memref<8x128xf32, #tpu.memory_space<vmem>>, vector<1x128xf32>,
      %33 = arith.mulf %29, %29 : vector<256x128xf32>
      %cst_19 = arith.constant dense<0.000000e+00> : vector<128xf32>
      %34 = vector.multi_reduction <add>, %33, %cst_19 [0] : vector<256x128xf32> to vector<128xf32>
      %35 = vector.shape_cast %34 : vector<128xf32> to vector<1x128xf32>
      %c1_20 = arith.constant 1 : index
      %c0_21 = arith.constant 0 : index
      %36 = vector.load %arg6[%c1_20, %c0_21] : memref<8x128xf32, #tpu.memory_space<vmem>>, vector<1x128xf32>
      tpu.vector_store %arg6[%c1_20, %c0_21], %35 {strides = array<i32>} : memref<8x128xf32, #tpu.memory_space<vmem>>, vector<1x128xf32>,
    } else {
    }
    return
  }
  func.func @transform_0(%arg0: i32) -> (i32, i32) {
    %c0_i32 = arith.constant 0 : i32
    %c0_i32_0 = arith.constant 0 : i32
    return %arg0, %c0_i32 : i32, i32
  }
  func.func @transform_1(%arg0: i32) -> (i32, i32) {
    %c0_i32 = arith.constant 0 : i32
    %c0_i32_0 = arith.constant 0 : i32
    %c0_i32_1 = arith.constant 0 : i32
    return %c0_i32, %c0_i32_0 : i32, i32
  }
  func.func @transform_2(%arg0: i32) -> (i32, i32) {
    %c0_i32 = arith.constant 0 : i32
    %c0_i32_0 = arith.constant 0 : i32
    %c0_i32_1 = arith.constant 0 : i32
    return %c0_i32, %c0_i32_0 : i32, i32
  }
  func.func @transform_3(%arg0: i32) -> (i32, i32) {
    %c0_i32 = arith.constant 0 : i32
    %c0_i32_0 = arith.constant 0 : i32
    %c0_i32_1 = arith.constant 0 : i32
    return %c0_i32, %c0_i32_0 : i32, i32
  }
  func.func @transform_4(%arg0: i32) -> (i32, i32) {
    %c0_i32 = arith.constant 0 : i32
    %c0_i32_0 = arith.constant 0 : i32
    return %arg0, %c0_i32 : i32, i32
  }
  func.func @transform_5(%arg0: i32) -> (i32, i32) {
    %c0_i32 = arith.constant 0 : i32
    %c0_i32_0 = arith.constant 0 : i32
    return %arg0, %c0_i32 : i32, i32
  }
}

module attributes {stable_mosaic.version = 11 : i64} {
  func.func @_matmul_stats_kernel(%arg0: i32, %arg1: memref<256x128xbf16, #tpu.memory_space<vmem>>, %arg2: memref<128x128xbf16, #tpu.memory_space<vmem>>, %arg3: memref<256x128xbf16, #tpu.memory_space<vmem>>, %arg4: memref<8x128xf32, #tpu.memory_space<vmem>>) attributes {dimension_semantics = [#tpu.dimension_semantics<parallel>], iteration_bounds = array<i64: 2>, scalar_prefetch = 0 : i64, scratch_operands = 0 : i64, tpu.core_type = #tpu.core_type<tc>, window_params = [{transform_indices = @transform_0, window_bounds = array<i64: 256, 128>}, {pipeline_mode = #tpu.pipeline_mode<synchronous>, transform_indices = @transform_1, window_bounds = array<i64: 128, 128>}, {transform_indices = @transform_2, window_bounds = array<i64: 256, 128>}, {transform_indices = @transform_3, window_bounds = array<i64: 8, 128>}]} {
    %c0 = arith.constant 0 : index
    %c0_0 = arith.constant 0 : index
    %0 = vector.load %arg1[%c0, %c0_0] : memref<256x128xbf16, #tpu.memory_space<vmem>>, vector<256x128xbf16>
    %c0_1 = arith.constant 0 : index
    %c0_2 = arith.constant 0 : index
    %1 = vector.load %arg2[%c0_1, %c0_2] : memref<128x128xbf16, #tpu.memory_space<vmem>>, vector<128x128xbf16>
    %cst = arith.constant dense<0.000000e+00> : vector<256x128xf32>
    %2 = tpu.matmul %0, %1, %cst {dimension_numbers = #tpu.dot_dimension_numbers<[1], [0], [0], [1], [0, 0, 1, 1], [], []>} : vector<256x128xbf16>, vector<128x128xbf16>, vector<256x128xf32> -> vector<256x128xf32>
    %3 = arith.truncf %2 : vector<256x128xf32> to vector<256x128xbf16>
    %c0_3 = arith.constant 0 : index
    %c0_4 = arith.constant 0 : index
    %4 = vector.load %arg3[%c0_3, %c0_4] : memref<256x128xbf16, #tpu.memory_space<vmem>>, vector<256x128xbf16>
    tpu.vector_store %arg3[%c0_3, %c0_4], %3 {strides = array<i32>} : memref<256x128xbf16, #tpu.memory_space<vmem>>, vector<256x128xbf16>,
    %cst_5 = arith.constant dense<0.000000e+00> : vector<128xf32>
    %5 = vector.multi_reduction <add>, %2, %cst_5 [0] : vector<256x128xf32> to vector<128xf32>
    %6 = vector.shape_cast %5 : vector<128xf32> to vector<1x128xf32>
    %c0_6 = arith.constant 0 : index
    %c0_7 = arith.constant 0 : index
    %7 = vector.load %arg4[%c0_6, %c0_7] : memref<8x128xf32, #tpu.memory_space<vmem>>, vector<1x128xf32>
    tpu.vector_store %arg4[%c0_6, %c0_7], %6 {strides = array<i32>} : memref<8x128xf32, #tpu.memory_space<vmem>>, vector<1x128xf32>,
    %8 = arith.mulf %2, %2 : vector<256x128xf32>
    %cst_8 = arith.constant dense<0.000000e+00> : vector<128xf32>
    %9 = vector.multi_reduction <add>, %8, %cst_8 [0] : vector<256x128xf32> to vector<128xf32>
    %10 = vector.shape_cast %9 : vector<128xf32> to vector<1x128xf32>
    %c1 = arith.constant 1 : index
    %c0_9 = arith.constant 0 : index
    %11 = vector.load %arg4[%c1, %c0_9] : memref<8x128xf32, #tpu.memory_space<vmem>>, vector<1x128xf32>
    tpu.vector_store %arg4[%c1, %c0_9], %10 {strides = array<i32>} : memref<8x128xf32, #tpu.memory_space<vmem>>, vector<1x128xf32>,
    return
  }
  func.func @transform_0(%arg0: i32) -> (i32, i32) {
    %c0_i32 = arith.constant 0 : i32
    %c0_i32_0 = arith.constant 0 : i32
    return %arg0, %c0_i32 : i32, i32
  }
  func.func @transform_1(%arg0: i32) -> (i32, i32) {
    %c0_i32 = arith.constant 0 : i32
    %c0_i32_0 = arith.constant 0 : i32
    %c0_i32_1 = arith.constant 0 : i32
    return %c0_i32, %c0_i32_0 : i32, i32
  }
  func.func @transform_2(%arg0: i32) -> (i32, i32) {
    %c0_i32 = arith.constant 0 : i32
    %c0_i32_0 = arith.constant 0 : i32
    return %arg0, %c0_i32 : i32, i32
  }
  func.func @transform_3(%arg0: i32) -> (i32, i32) {
    %c0_i32 = arith.constant 0 : i32
    %c0_i32_0 = arith.constant 0 : i32
    return %arg0, %c0_i32 : i32, i32
  }
}

module attributes {stable_mosaic.version = 11 : i64} {
  func.func @_bn_relu_kernel(%arg0: i32, %arg1: memref<256x128xbf16, #tpu.memory_space<vmem>>, %arg2: memref<1x128xf32, #tpu.memory_space<vmem>>, %arg3: memref<1x128xf32, #tpu.memory_space<vmem>>, %arg4: memref<256x128xf32, #tpu.memory_space<vmem>>) attributes {dimension_semantics = [#tpu.dimension_semantics<parallel>], iteration_bounds = array<i64: 2>, scalar_prefetch = 0 : i64, scratch_operands = 0 : i64, tpu.core_type = #tpu.core_type<tc>, window_params = [{transform_indices = @transform_0, window_bounds = array<i64: 256, 128>}, {pipeline_mode = #tpu.pipeline_mode<synchronous>, transform_indices = @transform_1, window_bounds = array<i64: 1, 128>}, {pipeline_mode = #tpu.pipeline_mode<synchronous>, transform_indices = @transform_2, window_bounds = array<i64: 1, 128>}, {transform_indices = @transform_3, window_bounds = array<i64: 256, 128>}]} {
    %c0 = arith.constant 0 : index
    %c0_0 = arith.constant 0 : index
    %0 = vector.load %arg1[%c0, %c0_0] : memref<256x128xbf16, #tpu.memory_space<vmem>>, vector<256x128xbf16>
    %1 = arith.extf %0 : vector<256x128xbf16> to vector<256x128xf32>
    %c0_1 = arith.constant 0 : index
    %c0_2 = arith.constant 0 : index
    %2 = vector.load %arg2[%c0_1, %c0_2] : memref<1x128xf32, #tpu.memory_space<vmem>>, vector<1x128xf32>
    %3 = vector.broadcast %2 : vector<1x128xf32> to vector<256x128xf32>
    %4 = arith.mulf %1, %3 : vector<256x128xf32>
    %c0_3 = arith.constant 0 : index
    %c0_4 = arith.constant 0 : index
    %5 = vector.load %arg3[%c0_3, %c0_4] : memref<1x128xf32, #tpu.memory_space<vmem>>, vector<1x128xf32>
    %6 = vector.broadcast %5 : vector<1x128xf32> to vector<256x128xf32>
    %7 = arith.addf %4, %6 : vector<256x128xf32>
    %cst = arith.constant 0.000000e+00 : f32
    %8 = vector.broadcast %cst : f32 to vector<256x128xf32>
    %9 = arith.maximumf %7, %8 : vector<256x128xf32>
    %c0_5 = arith.constant 0 : index
    %c0_6 = arith.constant 0 : index
    %10 = vector.load %arg4[%c0_5, %c0_6] : memref<256x128xf32, #tpu.memory_space<vmem>>, vector<256x128xf32>
    tpu.vector_store %arg4[%c0_5, %c0_6], %9 {strides = array<i32>} : memref<256x128xf32, #tpu.memory_space<vmem>>, vector<256x128xf32>,
    return
  }
  func.func @transform_0(%arg0: i32) -> (i32, i32) {
    %c0_i32 = arith.constant 0 : i32
    %c0_i32_0 = arith.constant 0 : i32
    return %arg0, %c0_i32 : i32, i32
  }
  func.func @transform_1(%arg0: i32) -> (i32, i32) {
    %c0_i32 = arith.constant 0 : i32
    %c0_i32_0 = arith.constant 0 : i32
    %c0_i32_1 = arith.constant 0 : i32
    return %c0_i32, %c0_i32_0 : i32, i32
  }
  func.func @transform_2(%arg0: i32) -> (i32, i32) {
    %c0_i32 = arith.constant 0 : i32
    %c0_i32_0 = arith.constant 0 : i32
    %c0_i32_1 = arith.constant 0 : i32
    return %c0_i32, %c0_i32_0 : i32, i32
  }
  func.func @transform_3(%arg0: i32) -> (i32, i32) {
    %c0_i32 = arith.constant 0 : i32
    %c0_i32_0 = arith.constant 0 : i32
    return %arg0, %c0_i32 : i32, i32
  }
}

</mosaic_0001>

<bundles_post_ra>
// kernel: apply_node_func.5
= control target key start
LH: loop header
LB: loop body
LE: loop exit
PB: predicated region body
PF: predicated region fallthrough
CT: control target
= control target key end

     0   :  { %s558_s12 = smov 0   ;;  %s705_s0 = inlined_call_operand.vmem [shape: bf16[512,128], index: 0, kind: input, shape index: {}]   ;;  %s706_s1 = inlined_call_operand.vmem [shape: f32[1,128], index: 1, kind: input, shape index: {}]   ;;  %s707_s2 = inlined_call_operand.vmem [shape: f32[1,128], index: 2, kind: input, shape index: {}]   ;;  %s708_s3 = inlined_call_operand.vmem [shape: f32[512,128], index: 3, kind: output, shape index: {}]  }
   0x1 LB: > { %s430_s13 = sadd.s32 4294967295, %s536_s12   ;;  %p434_p0 = scmp.ge.s32.totalorder %s536_s12, 1  ;;  %s536_s12 = sphi %s558_s12, %s13_s12  }
   0x2   : > { %p138_p1 = scmp.lt.s32.totalorder %s536_s12, 3 }
   0x4   : > { %p139_p2 = pnand %p434_p0, %p138_p1 }
   0x5   : > { %s435_s14 = sshll.u32 (!%p139_p2), %s430_s13, 5 }
   0x6   : > { %142 = sbr.rel (%p139_p2) target bundleno = 55 (0x37), region = 32  ;;  %p163_p3 = scmp.lt.s32.totalorder (!%p139_p2), %s435_s14, 63 }
   0xb   : > { %s710_s14 = smov (!%p163_p3, %s435_s14), 63  ;;  %v577_v0 = vld [vmem:[%s706_s1] ss:$0 sm:$0xff] }
   0xc   : > { %s436_s15 = sshll.u32 %s710_s14, 2  ;;  %v585_v5 = vld [vmem:[%s707_s2] ss:$0 sm:$0xff]  ;;  %s438_s23 = sshll.u32 %s710_s14, 3 }
   0xd   : > { %s572_s18 = scalar_lea.vmem %s705_s0, %s436_s15  ;;  %s604_s26 = scalar_lea.vmem %s708_s3, %s438_s23 }
   0xe   : > { %v442_v1 = vld [vmem:[%s572_s18] sm:$0xff]   ;;  %v505_v2 = vld [vmem:[%s572_s18 + $0x8] sm:$0xff]   ;;  %v506_v3 = vld [vmem:[%s572_s18 + $0x10] sm:$0xff]  }
   0xf   : > { %v443_v4 = vunpack.c.l.bf16 %v442_v1  ;;  %v444_v6 = vunpack.c.h.bf16 %v442_v1  ;;  %v447_v7 = vunpack.c.l.bf16 %v505_v2  ;;  %v448_v8 = vunpack.c.h.bf16 %v505_v2  ;;  %v507_v9 = vld [vmem:[%s572_s18 + $0x18] sm:$0xff]   ;;  %v508_v30 = vld [vmem:[%s572_s18 + $0x20] sm:$0xff]   ;;  %v509_v31 = vld [vmem:[%s572_s18 + $0x28] sm:$0xff]  }
  0x10   : > { %v451_v10 = vunpack.c.l.bf16 %v506_v3  ;;  %v452_v11 = vunpack.c.h.bf16 %v506_v3  ;;  %v455_v12 = vunpack.c.l.bf16 %v507_v9  ;;  %v456_v13 = vunpack.c.h.bf16 %v507_v9  ;;  %v510_v36 = vld [vmem:[%s572_s18 + $0x30] sm:$0xff]   ;;  %v511_v37 = vld [vmem:[%s572_s18 + $0x38] sm:$0xff]   ;;  %v512_v3 = vld [vmem:[%s572_s18 + $0x40] sm:$0xff]  }
  0x11   : > { %v242_v14 = vmul.f32 %v577_v0, %v443_v4  ;;  %v243_v15 = vmul.f32 %v577_v0, %v444_v6  ;;  %v244_v16 = vmul.f32 %v577_v0, %v447_v7  ;;  %v245_v17 = vmul.f32 %v577_v0, %v448_v8  ;;  %v513_v4 = vld [vmem:[%s572_s18 + $0x48] sm:$0xff]   ;;  %v514_v6 = vld [vmem:[%s572_s18 + $0x50] sm:$0xff]  }
  0x12   : > { %v246_v18 = vmul.f32 %v577_v0, %v451_v10  ;;  %v247_v19 = vmul.f32 %v577_v0, %v452_v11  ;;  %v248_v20 = vmul.f32 %v577_v0, %v455_v12  ;;  %v249_v21 = vmul.f32 %v577_v0, %v456_v13  ;;  %v515_v11 = vld [vmem:[%s572_s18 + $0x58] sm:$0xff]  }
  0x13   : > { %v278_v22 = vadd.f32 %v585_v5, %v242_v14  ;;  %v279_v23 = vadd.f32 %v585_v5, %v243_v15  ;;  %v280_v24 = vadd.f32 %v585_v5, %v244_v16  ;;  %v281_v25 = vadd.f32 %v585_v5, %v245_v17 }
  0x14   : > { %v282_v26 = vadd.f32 %v585_v5, %v246_v18  ;;  %v283_v27 = vadd.f32 %v585_v5, %v247_v19  ;;  %v284_v28 = vadd.f32 %v585_v5, %v248_v20  ;;  %v285_v29 = vadd.f32 %v585_v5, %v249_v21 }
  0x15   : > { %v310_v32 = vmax.f32 %v278_v22, 0.0  ;;  %v311_v33 = vmax.f32 %v279_v23, 0.0  ;;  %v312_v34 = vmax.f32 %v280_v24, 0.0  ;;  %v313_v35 = vmax.f32 %v281_v25, 0.0 }
  0x16   : > { %v314_v38 = vmax.f32 %v282_v26, 0.0  ;;  %v315_v39 = vmax.f32 %v283_v27, 0.0  ;;  %v316_v40 = vmax.f32 %v284_v28, 0.0  ;;  %v317_v41 = vmax.f32 %v285_v29, 0.0 }
  0x17   : > { %342 = vst [vmem:[%s604_s26] sm:$0xff] %v310_v32  ;;  %v459_v42 = vunpack.c.l.bf16 %v508_v30  ;;  %v460_v43 = vunpack.c.h.bf16 %v508_v30  ;;  %v463_v44 = vunpack.c.l.bf16 %v509_v31  ;;  %v464_v45 = vunpack.c.h.bf16 %v509_v31 }
  0x18   : > { %343 = vst [vmem:[%s604_s26 + $0x8] sm:$0xff] %v311_v33  ;;  %v467_v46 = vunpack.c.l.bf16 %v510_v36  ;;  %v468_v47 = vunpack.c.h.bf16 %v510_v36  ;;  %v471_v48 = vunpack.c.l.bf16 %v511_v37  ;;  %v472_v49 = vunpack.c.h.bf16 %v511_v37 }
  0x19   : > { %344 = vst [vmem:[%s604_s26 + $0x10] sm:$0xff] %v312_v34  ;;  %v250_v50 = vmul.f32 %v577_v0, %v459_v42  ;;  %v251_v51 = vmul.f32 %v577_v0, %v460_v43  ;;  %v252_v52 = vmul.f32 %v577_v0, %v463_v44  ;;  %v253_v53 = vmul.f32 %v577_v0, %v464_v45  ;;  %v518_v42 = vld [vmem:[%s572_s18 + $0x70] sm:$0xff]  }
  0x1a   : > { %345 = vst [vmem:[%s604_s26 + $0x18] sm:$0xff] %v313_v35  ;;  %v254_v54 = vmul.f32 %v577_v0, %v467_v46  ;;  %v255_v55 = vmul.f32 %v577_v0, %v468_v47  ;;  %v256_v56 = vmul.f32 %v577_v0, %v471_v48  ;;  %v257_v57 = vmul.f32 %v577_v0, %v472_v49  ;;  %v519_v47 = vld [vmem:[%s572_s18 + $0x78] sm:$0xff]  }
  0x1b   : > { %346 = vst [vmem:[%s604_s26 + $0x20] sm:$0xff] %v314_v38  ;;  %v286_v58 = vadd.f32 %v585_v5, %v250_v50  ;;  %v287_v59 = vadd.f32 %v585_v5, %v251_v51  ;;  %v288_v60 = vadd.f32 %v585_v5, %v252_v52  ;;  %v289_v61 = vadd.f32 %v585_v5, %v253_v53 }
  0x1c   : > { %347 = vst [vmem:[%s604_s26 + $0x28] sm:$0xff] %v315_v39  ;;  %v290_v62 = vadd.f32 %v585_v5, %v254_v54  ;;  %v291_v63 = vadd.f32 %v585_v5, %v255_v55  ;;  %v292_v1 = vadd.f32 %v585_v5, %v256_v56  ;;  %v293_v2 = vadd.f32 %v585_v5, %v257_v57 }
  0x1d   : > { %348 = vst [vmem:[%s604_s26 + $0x30] sm:$0xff] %v316_v40  ;;  %v318_v7 = vmax.f32 %v286_v58, 0.0  ;;  %v319_v8 = vmax.f32 %v287_v59, 0.0  ;;  %v320_v9 = vmax.f32 %v288_v60, 0.0  ;;  %v321_v10 = vmax.f32 %v289_v61, 0.0  ;;  %v516_v40 = vld [vmem:[%s572_s18 + $0x60] sm:$0xff]  }
  0x1e   : > { %349 = vst [vmem:[%s604_s26 + $0x38] sm:$0xff] %v317_v41  ;;  %v322_v12 = vmax.f32 %v290_v62, 0.0  ;;  %v323_v13 = vmax.f32 %v291_v63, 0.0  ;;  %v324_v14 = vmax.f32 %v292_v1, 0.0  ;;  %v325_v15 = vmax.f32 %v293_v2, 0.0  ;;  %v517_v41 = vld [vmem:[%s572_s18 + $0x68] sm:$0xff]  }
  0x1f   : > { %350 = vst [vmem:[%s604_s26 + $0x40] sm:$0xff] %v318_v7  ;;  %v475_v16 = vunpack.c.l.bf16 %v512_v3  ;;  %v476_v17 = vunpack.c.h.bf16 %v512_v3  ;;  %v479_v18 = vunpack.c.l.bf16 %v513_v4  ;;  %v480_v19 = vunpack.c.h.bf16 %v513_v4 }
  0x20   : > { %351 = vst [vmem:[%s604_s26 + $0x48] sm:$0xff] %v319_v8  ;;  %v483_v20 = vunpack.c.l.bf16 %v514_v6  ;;  %v484_v21 = vunpack.c.h.bf16 %v514_v6  ;;  %v487_v22 = vunpack.c.l.bf16 %v515_v11  ;;  %v488_v23 = vunpack.c.h.bf16 %v515_v11 }
  0x21   : > { %352 = vst [vmem:[%s604_s26 + $0x50] sm:$0xff] %v320_v9  ;;  %v258_v24 = vmul.f32 %v577_v0, %v475_v16  ;;  %v259_v25 = vmul.f32 %v577_v0, %v476_v17  ;;  %v260_v26 = vmul.f32 %v577_v0, %v479_v18  ;;  %v261_v27 = vmul.f32 %v577_v0, %v480_v19 }
  0x22   : > { %353 = vst [vmem:[%s604_s26 + $0x58] sm:$0xff] %v321_v10  ;;  %v262_v28 = vmul.f32 %v577_v0, %v483_v20  ;;  %v263_v29 = vmul.f32 %v577_v0, %v484_v21  ;;  %v264_v30 = vmul.f32 %v577_v0, %v487_v22  ;;  %v265_v31 = vmul.f32 %v577_v0, %v488_v23 }
  0x23   : > { %354 = vst [vmem:[%s604_s26 + $0x60] sm:$0xff] %v322_v12  ;;  %v294_v32 = vadd.f32 %v585_v5, %v258_v24  ;;  %v295_v33 = vadd.f32 %v585_v5, %v259_v25  ;;  %v296_v34 = vadd.f32 %v585_v5, %v260_v26  ;;  %v297_v35 = vadd.f32 %v585_v5, %v261_v27 }
  0x24   : > { %355 = vst [vmem:[%s604_s26 + $0x68] sm:$0xff] %v323_v13  ;;  %v298_v36 = vadd.f32 %v585_v5, %v262_v28  ;;  %v299_v37 = vadd.f32 %v585_v5, %v263_v29  ;;  %v300_v38 = vadd.f32 %v585_v5, %v264_v30  ;;  %v301_v39 = vadd.f32 %v585_v5, %v265_v31 }
  0x25   : > { %356 = vst [vmem:[%s604_s26 + $0x70] sm:$0xff] %v324_v14  ;;  %v326_v43 = vmax.f32 %v294_v32, 0.0  ;;  %v327_v44 = vmax.f32 %v295_v33, 0.0  ;;  %v328_v45 = vmax.f32 %v296_v34, 0.0  ;;  %v329_v46 = vmax.f32 %v297_v35, 0.0 }
  0x26   : > { %357 = vst [vmem:[%s604_s26 + $0x78] sm:$0xff] %v325_v15  ;;  %v330_v48 = vmax.f32 %v298_v36, 0.0  ;;  %v331_v49 = vmax.f32 %v299_v37, 0.0  ;;  %v332_v50 = vmax.f32 %v300_v38, 0.0  ;;  %v333_v51 = vmax.f32 %v301_v39, 0.0 }
  0x27   : > { %358 = vst [vmem:[%s604_s26 + $0x80] sm:$0xff] %v326_v43  ;;  %v491_v52 = vunpack.c.l.bf16 %v516_v40  ;;  %v492_v53 = vunpack.c.h.bf16 %v516_v40  ;;  %v495_v54 = vunpack.c.l.bf16 %v517_v41  ;;  %v496_v55 = vunpack.c.h.bf16 %v517_v41 }
  0x28   : > { %359 = vst [vmem:[%s604_s26 + $0x88] sm:$0xff] %v327_v44  ;;  %v499_v56 = vunpack.c.l.bf16 %v518_v42  ;;  %v500_v57 = vunpack.c.h.bf16 %v518_v42  ;;  %v503_v58 = vunpack.c.l.bf16 %v519_v47  ;;  %v504_v59 = vunpack.c.h.bf16 %v519_v47 }
  0x29   : > { %360 = vst [vmem:[%s604_s26 + $0x90] sm:$0xff] %v328_v45  ;;  %v266_v60 = vmul.f32 %v577_v0, %v491_v52  ;;  %v267_v61 = vmul.f32 %v577_v0, %v492_v53  ;;  %v268_v62 = vmul.f32 %v577_v0, %v495_v54  ;;  %v269_v63 = vmul.f32 %v577_v0, %v496_v55 }
  0x2a   : > { %361 = vst [vmem:[%s604_s26 + $0x98] sm:$0xff] %v329_v46  ;;  %v270_v1 = vmul.f32 %v577_v0, %v499_v56  ;;  %v271_v2 = vmul.f32 %v577_v0, %v500_v57  ;;  %v272_v3 = vmul.f32 %v577_v0, %v503_v58  ;;  %v273_v4 = vmul.f32 %v577_v0, %v504_v59 }
  0x2b   : > { %362 = vst [vmem:[%s604_s26 + $0xa0] sm:$0xff] %v330_v48  ;;  %v302_v6 = vadd.f32 %v585_v5, %v266_v60  ;;  %v303_v7 = vadd.f32 %v585_v5, %v267_v61  ;;  %v304_v8 = vadd.f32 %v585_v5, %v268_v62  ;;  %v305_v9 = vadd.f32 %v585_v5, %v269_v63 }
  0x2c   : > { %363 = vst [vmem:[%s604_s26 + $0xa8] sm:$0xff] %v331_v49  ;;  %v306_v10 = vadd.f32 %v585_v5, %v270_v1  ;;  %v307_v11 = vadd.f32 %v585_v5, %v271_v2  ;;  %v308_v14 = vadd.f32 %v585_v5, %v272_v3  ;;  %v309_v16 = vadd.f32 %v585_v5, %v273_v4 }
  0x2d   : > { %364 = vst [vmem:[%s604_s26 + $0xb0] sm:$0xff] %v332_v50  ;;  %v334_v0 = vmax.f32 %v302_v6, 0.0  ;;  %v335_v12 = vmax.f32 %v303_v7, 0.0  ;;  %v336_v13 = vmax.f32 %v304_v8, 0.0  ;;  %v337_v15 = vmax.f32 %v305_v9, 0.0 }
  0x2e   : > { %365 = vst [vmem:[%s604_s26 + $0xb8] sm:$0xff] %v333_v51  ;;  %v338_v17 = vmax.f32 %v306_v10, 0.0  ;;  %v339_v18 = vmax.f32 %v307_v11, 0.0  ;;  %v340_v19 = vmax.f32 %v308_v14, 0.0  ;;  %v341_v20 = vmax.f32 %v309_v16, 0.0 }
  0x2f   : > { %366 = vst [vmem:[%s604_s26 + $0xc0] sm:$0xff] %v334_v0 }
  0x30   : > { %367 = vst [vmem:[%s604_s26 + $0xc8] sm:$0xff] %v335_v12 }
  0x31   : > { %368 = vst [vmem:[%s604_s26 + $0xd0] sm:$0xff] %v336_v13 }
  0x32   : > { %369 = vst [vmem:[%s604_s26 + $0xd8] sm:$0xff] %v337_v15 }
  0x33   : > { %370 = vst [vmem:[%s604_s26 + $0xe0] sm:$0xff] %v338_v17 }
  0x34   : > { %371 = vst [vmem:[%s604_s26 + $0xe8] sm:$0xff] %v339_v18 }
  0x35   : > { %372 = vst [vmem:[%s604_s26 + $0xf0] sm:$0xff] %v340_v19 }
  0x36   : > { %373 = vst [vmem:[%s604_s26 + $0xf8] sm:$0xff] %v341_v20 }
  0x37 PF: > { %s13_s12 = sadd.s32 1, %s536_s12  }
  0x38   : > { %p10_p4 = scmp.ge.s32.totalorder %s13_s12, 4  }
  0x3a   :  { %12 = sbr.rel (!%p10_p4) target bundleno = 1 (0x1), region = 62 }

// kernel: apply_node_func.3
= control target key start
LH: loop header
LB: loop body
LE: loop exit
PB: predicated region body
PF: predicated region fallthrough
CT: control target
= control target key end

     0   :  { %s1012_s12 = smov 0   ;;  %s1224_s0 = inlined_call_operand.vmem [shape: bf16[512,128], index: 0, kind: input, shape index: {}]   ;;  %s1225_s1 = inlined_call_operand.vmem [shape: bf16[128,128], index: 1, kind: input, shape index: {}]   ;;  %s1226_s2 = inlined_call_operand.vmem [shape: bf16[512,128], index: 2, kind: output, shape index: {0}]   ;;  %s1227_s3 = inlined_call_operand.vmem [shape: f32[16,128], index: 3, kind: output, shape index: {1}]  }
   0x1 LB: > { %s1018_s13 = sadd.s32 4294967295, %s990_s12   ;;  %p729_p0 = scmp.ge.s32.totalorder %s990_s12, 1  ;;  %s990_s12 = sphi %s1012_s12, %s14_s12  }
   0x2   : > { %p141_p1 = scmp.lt.s32.totalorder %s990_s12, 3 }
   0x4   : > { %p142_p2 = pnand %p729_p0, %p141_p1 }
   0x5   : > { %s730_s22 = sshll.u32 (!%p142_p2), %s1018_s13, 5  ;;  %p181_p4 = scmp.lt.s32.totalorder (!%p142_p2), %s1018_s13, 1 }
   0x6   : > { %145 = sbr.rel (%p142_p2) target bundleno = 290 (0x122), region = 28  ;;  %p170_p3 = scmp.lt.s32.totalorder (!%p142_p2), %s730_s22, 63 }
   0xb   : > { %v856_v0 = vld [vmem:[%s1225_s1 + $0x38] sm:$0xff]  ;;  %v855_v1 = vld [vmem:[%s1225_s1 + $0x30] sm:$0xff]  ;;  %v854_v2 = vld [vmem:[%s1225_s1 + $0x28] sm:$0xff]  ;;  %s1229_s22 = smov (!%p170_p3, %s730_s22), 63  ;;  %s1231_s13 = smov (!%p181_p4, %s1018_s13), 1 }
   0xc   : > { %377 = vmatpush.bf16.msra.mxu0 %v856_v0  ;;  %952 = vmatpush.bf16.msra.mxu1 %v856_v0  ;;  %v853_v3 = vld [vmem:[%s1225_s1 + $0x20] sm:$0xff]  ;;  %v852_v4 = vld [vmem:[%s1225_s1 + $0x18] sm:$0xff]  ;;  %v851_v5 = vld [vmem:[%s1225_s1 + $0x10] sm:$0xff]  ;;  %s731_s29 = sshll.u32 %s1229_s22, 2  ;;  %s734_s11 = sshll.u32 %s1231_s13, 3 }
   0xd   : > { %953 = vmatpush.bf16.msra.mxu2 %v856_v0  ;;  %954 = vmatpush.bf16.msra.mxu3 %v856_v0  ;;  %v850_v6 = vld [vmem:[%s1225_s1 + $0x8] sm:$0xff]  ;;  %v849_v7 = vld [vmem:[%s1225_s1] sm:$0xff]  ;;  %s1055_s7 = scalar_lea.vmem %s1224_s0, %s731_s29  ;;  %s1082_s10 = scalar_lea.vmem %s1226_s2, %s731_s29 }
   0xe   : > { %v833_v8 = vld [vmem:[%s1055_s7] sm:$0xff]  ;;  %v834_v12 = vld [vmem:[%s1055_s7 + $0x8] sm:$0xff]  ;;  %v835_v16 = vld [vmem:[%s1055_s7 + $0x10] sm:$0xff]  ;;  %s184_s16 = scalar_lea.vmem %s1227_s3, %s734_s11 }
   0xf   : > { %v837_v9 = vld [vmem:[%s1055_s7 + $0x20] sm:$0xff]  ;;  %v838_v13 = vld [vmem:[%s1055_s7 + $0x28] sm:$0xff]  ;;  %v839_v17 = vld [vmem:[%s1055_s7 + $0x30] sm:$0xff] }
  0x10   : > { %378 = vmatpush.bf16.msra.mxu0 %v855_v1  ;;  %955 = vmatpush.bf16.msra.mxu1 %v855_v1  ;;  %v841_v10 = vld [vmem:[%s1055_s7 + $0x40] sm:$0xff]  ;;  %v842_v14 = vld [vmem:[%s1055_s7 + $0x48] sm:$0xff]  ;;  %v843_v18 = vld [vmem:[%s1055_s7 + $0x50] sm:$0xff] }
  0x11   : > { %956 = vmatpush.bf16.msra.mxu2 %v855_v1  ;;  %957 = vmatpush.bf16.msra.mxu3 %v855_v1  ;;  %v845_v11 = vld [vmem:[%s1055_s7 + $0x60] sm:$0xff]  ;;  %v846_v15 = vld [vmem:[%s1055_s7 + $0x68] sm:$0xff]  ;;  %v847_v19 = vld [vmem:[%s1055_s7 + $0x70] sm:$0xff] }
  0x12   : > { %v836_v20 = vld [vmem:[%s1055_s7 + $0x18] sm:$0xff] }
  0x13   : > { %v840_v21 = vld [vmem:[%s1055_s7 + $0x38] sm:$0xff] }
  0x14   : > { %379 = vmatpush.bf16.msra.mxu0 %v854_v2  ;;  %958 = vmatpush.bf16.msra.mxu1 %v854_v2  ;;  %v844_v22 = vld [vmem:[%s1055_s7 + $0x58] sm:$0xff] }
  0x15   : > { %959 = vmatpush.bf16.msra.mxu2 %v854_v2  ;;  %960 = vmatpush.bf16.msra.mxu3 %v854_v2  ;;  %v848_v23 = vld [vmem:[%s1055_s7 + $0x78] sm:$0xff] }
  0x18   : > { %380 = vmatpush.bf16.msra.mxu0 %v853_v3  ;;  %961 = vmatpush.bf16.msra.mxu1 %v853_v3 }
  0x19   : > { %962 = vmatpush.bf16.msra.mxu2 %v853_v3  ;;  %963 = vmatpush.bf16.msra.mxu3 %v853_v3 }
  0x1c   : > { %381 = vmatpush.bf16.msra.mxu0 %v852_v4  ;;  %964 = vmatpush.bf16.msra.mxu1 %v852_v4 }
  0x1d   : > { %965 = vmatpush.bf16.msra.mxu2 %v852_v4  ;;  %966 = vmatpush.bf16.msra.mxu3 %v852_v4 }
  0x20   : > { %382 = vmatpush.bf16.msra.mxu0 %v851_v5  ;;  %967 = vmatpush.bf16.msra.mxu1 %v851_v5 }
  0x21   : > { %968 = vmatpush.bf16.msra.mxu2 %v851_v5  ;;  %969 = vmatpush.bf16.msra.mxu3 %v851_v5 }
  0x24   : > { %383 = vmatpush.bf16.msra.mxu0 %v850_v6  ;;  %970 = vmatpush.bf16.msra.mxu1 %v850_v6 }
  0x25   : > { %971 = vmatpush.bf16.msra.mxu2 %v850_v6  ;;  %972 = vmatpush.bf16.msra.mxu3 %v850_v6 }
  0x28   : > { %384 = vmatpush.bf16.msra.mxu0 %v849_v7  ;;  %973 = vmatpush.bf16.msra.mxu1 %v849_v7 }
  0x29   : > { %974 = vmatpush.bf16.msra.mxu2 %v849_v7  ;;  %975 = vmatpush.bf16.msra.mxu3 %v849_v7 }
  0x2b   : > { %385 = vmatmul.bf16.vlgmr.msra.gmra.mxu0 %v833_v8  ;;  %405 = vmatmul.bf16.vlgmr.msra.gmra.mxu1 %v837_v9 }
  0x2c   : > { %425 = vmatmul.bf16.vlgmr.msra.gmra.mxu2 %v841_v10  ;;  %445 = vmatmul.bf16.vlgmr.msra.gmra.mxu3 %v845_v11 }
  0x3b   : > { %390 = vmatmul.bf16.gmra.mxu0 %v834_v12  ;;  %410 = vmatmul.bf16.gmra.mxu1 %v838_v13 }
  0x3c   : > { %430 = vmatmul.bf16.gmra.mxu2 %v842_v14  ;;  %450 = vmatmul.bf16.gmra.mxu3 %v846_v15 }
  0x4b   : > { %395 = vmatmul.bf16.gmra.mxu0 %v835_v16  ;;  %415 = vmatmul.bf16.gmra.mxu1 %v839_v17 }
  0x4c   : > { %435 = vmatmul.bf16.gmra.mxu2 %v843_v18  ;;  %455 = vmatmul.bf16.gmra.mxu3 %v847_v19 }
  0x5b   : > { %400 = vmatmul.bf16.gmra.mxu0 %v836_v20  ;;  %420 = vmatmul.bf16.gmra.mxu1 %v840_v21 }
  0x5c   : > { %440 = vmatmul.bf16.gmra.mxu2 %v844_v22  ;;  %460 = vmatmul.bf16.gmra.mxu3 %v848_v23 }
  0xa8   : > { %v386_v24 = vpop.f32.mrf.mxu0  ;;  %v1073_v25 = vpop.f32.mrf.mxu1 }
  0xa9   : > { %v568_v57 = vmul.f32 %v386_v24, %v386_v24 }
  0xaf   : > { %v1075_v26 = vpop.f32.mrf.mxu2  ;;  %v1088_v31 = vpop.f32.mrf.mxu3 }
  0xb0   : > { %v388_v27 = vpop.f32.mrf.mxu0  ;;  %v1084_v28 = vpop.f32.mrf.mxu1 }
  0xb1   : > { %v860_v29 = vpack.c.bf16 %v388_v27, %v386_v24  ;;  %v880_v30 = vpack.c.bf16 %v1084_v28, %v1073_v25  ;;  %v569_v56 = vmul.f32 %v388_v27, %v388_v27  ;;  %v530_v59 = vadd.f32 %v388_v27, %v386_v24 }
  0xb2   : > { %v576_v27 = vmul.f32 %v1073_v25, %v1073_v25 }
  0xb3   : > { %861 = vst [vmem:[%s1082_s10] sm:$0xff] %v860_v29   ;;  %v600_v60 = vadd.f32 %v569_v56, %v568_v57 }
  0xb4   : > { %940 = vst [vmem:[%s1082_s10 + $0x20] sm:$0xff] %v880_v30  }
  0xb7   : > { %v1092_v32 = vpop.f32.mrf.mxu2  ;;  %v1098_v36 = vpop.f32.mrf.mxu3 }
  0xb8   : > { %v391_v33 = vpop.f32.mrf.mxu0  ;;  %v1094_v34 = vpop.f32.mrf.mxu1  ;;  %v900_v35 = vpack.c.bf16 %v1092_v32, %v1075_v26  ;;  %v920_v37 = vpack.c.bf16 %v1098_v36, %v1088_v31 }
  0xb9   : > { %v570_v58 = vmul.f32 %v391_v33, %v391_v33  ;;  %v531_v62 = vadd.f32 %v530_v59, %v391_v33 }
  0xba   : > { %944 = vst [vmem:[%s1082_s10 + $0x40] sm:$0xff] %v900_v35  }
  0xbb   : > { %948 = vst [vmem:[%s1082_s10 + $0x60] sm:$0xff] %v920_v37   ;;  %v601_v0 = vadd.f32 %v600_v60, %v570_v58 }
  0xbf   : > { %v1104_v38 = vpop.f32.mrf.mxu2  ;;  %v1110_v43 = vpop.f32.mrf.mxu3 }
  0xc0   : > { %v393_v39 = vpop.f32.mrf.mxu0  ;;  %v1106_v40 = vpop.f32.mrf.mxu1 }
  0xc1   : > { %v865_v41 = vpack.c.bf16 %v393_v39, %v391_v33  ;;  %v885_v42 = vpack.c.bf16 %v1106_v40, %v1094_v34  ;;  %v571_v61 = vmul.f32 %v393_v39, %v393_v39  ;;  %v532_v5 = vadd.f32 %v531_v62, %v393_v39 }
  0xc2   : > { %v577_v33 = vmul.f32 %v1084_v28, %v1084_v28  ;;  %v578_v39 = vmul.f32 %v1094_v34, %v1094_v34 }
  0xc3   : > { %937 = vst [vmem:[%s1082_s10 + $0x8] sm:$0xff] %v865_v41   ;;  %v602_v7 = vadd.f32 %v601_v0, %v571_v61 }
  0xc4   : > { %941 = vst [vmem:[%s1082_s10 + $0x28] sm:$0xff] %v885_v42  }
  0xc7   : > { %v1114_v44 = vpop.f32.mrf.mxu2  ;;  %v1120_v48 = vpop.f32.mrf.mxu3 }
  0xc8   : > { %v396_v45 = vpop.f32.mrf.mxu0  ;;  %v1116_v46 = vpop.f32.mrf.mxu1  ;;  %v905_v47 = vpack.c.bf16 %v1114_v44, %v1104_v38  ;;  %v925_v49 = vpack.c.bf16 %v1120_v48, %v1110_v43 }
  0xc9   : > { %v572_v1 = vmul.f32 %v396_v45, %v396_v45  ;;  %v533_v10 = vadd.f32 %v532_v5, %v396_v45  ;;  %v585_v5 = vmul.f32 %v1092_v32, %v1092_v32 }
  0xca   : > { %945 = vst [vmem:[%s1082_s10 + $0x48] sm:$0xff] %v905_v47  }
  0xcb   : > { %949 = vst [vmem:[%s1082_s10 + $0x68] sm:$0xff] %v925_v49   ;;  %v603_v11 = vadd.f32 %v602_v7, %v572_v1 }
  0xcf   : > { %v1126_v50 = vpop.f32.mrf.mxu2  ;;  %v1132_v55 = vpop.f32.mrf.mxu3 }
  0xd0   : > { %v398_v51 = vpop.f32.mrf.mxu0  ;;  %v1128_v52 = vpop.f32.mrf.mxu1 }
  0xd1   : > { %v870_v53 = vpack.c.bf16 %v398_v51, %v396_v45  ;;  %v890_v54 = vpack.c.bf16 %v1128_v52, %v1116_v46  ;;  %v573_v8 = vmul.f32 %v398_v51, %v398_v51  ;;  %v534_v13 = vadd.f32 %v533_v10, %v398_v51 }
  0xd2   : > { %v581_v57 = vmul.f32 %v1128_v52, %v1128_v52  ;;  %v587_v10 = vmul.f32 %v1114_v44, %v1114_v44 }
  0xd3   : > { %938 = vst [vmem:[%s1082_s10 + $0x10] sm:$0xff] %v870_v53   ;;  %v604_v14 = vadd.f32 %v603_v11, %v573_v8 }
  0xd4   : > { %942 = vst [vmem:[%s1082_s10 + $0x30] sm:$0xff] %v890_v54   ;;  %v580_v54 = vmul.f32 %v1116_v46, %v1116_v46 }
  0xd7   : > { %v1136_v63 = vpop.f32.mrf.mxu2  ;;  %v1140_v6 = vpop.f32.mrf.mxu3 }
  0xd8   : > { %v401_v2 = vpop.f32.mrf.mxu0  ;;  %v421_v3 = vpop.f32.mrf.mxu1  ;;  %v910_v4 = vpack.c.bf16 %v1136_v63, %v1126_v50  ;;  %v930_v9 = vpack.c.bf16 %v1140_v6, %v1132_v55 }
  0xd9   : > { %v574_v12 = vmul.f32 %v401_v2, %v401_v2  ;;  %v535_v15 = vadd.f32 %v534_v13, %v401_v2  ;;  %v582_v60 = vmul.f32 %v421_v3, %v421_v3 }
  0xda   : > { %946 = vst [vmem:[%s1082_s10 + $0x50] sm:$0xff] %v910_v4  }
  0xdb   : > { %950 = vst [vmem:[%s1082_s10 + $0x70] sm:$0xff] %v930_v9   ;;  %v605_v17 = vadd.f32 %v604_v14, %v574_v12 }
  0xdf   : > { %v441_v16 = vpop.f32.mrf.mxu2  ;;  %v1146_v24 = vpop.f32.mrf.mxu3 }
  0xe0   : > { %v403_v18 = vpop.f32.mrf.mxu0  ;;  %v423_v19 = vpop.f32.mrf.mxu1 }
  0xe1   : > { %v875_v20 = vpack.c.bf16 %v403_v18, %v401_v2  ;;  %v536_v21 = vadd.f32 %v535_v15, %v403_v18  ;;  %v575_v22 = vmul.f32 %v403_v18, %v403_v18  ;;  %v895_v23 = vpack.c.bf16 %v423_v19, %v421_v3 }
  0xe2   : > { %v583_v1 = vmul.f32 %v423_v19, %v423_v19  ;;  %v584_v2 = vmul.f32 %v1075_v26, %v1075_v26  ;;  %v589_v15 = vmul.f32 %v1136_v63, %v1136_v63 }
  0xe3   : > { %939 = vst [vmem:[%s1082_s10 + $0x18] sm:$0xff] %v875_v20   ;;  %v537_v29 = vadd.f32 %v536_v21, %v1073_v25  ;;  %v606_v30 = vadd.f32 %v605_v17, %v575_v22  ;;  %v579_v25 = vmul.f32 %v1106_v40, %v1106_v40 }
  0xe4   : > { %943 = vst [vmem:[%s1082_s10 + $0x38] sm:$0xff] %v895_v23  }
  0xe5   : > { %v538_v35 = vadd.f32 %v537_v29, %v1084_v28  ;;  %v607_v37 = vadd.f32 %v606_v30, %v576_v27 }
  0xe7   : > { %v539_v41 = vadd.f32 %v538_v35, %v1094_v34  ;;  %v608_v42 = vadd.f32 %v607_v37, %v577_v33  ;;  %v443_v45 = vpop.f32.mrf.mxu2  ;;  %v1162_v53 = vpop.f32.mrf.mxu3  ;;  %v595_v35 = vmul.f32 %v1120_v48, %v1120_v48 }
  0xe8   : > { %v915_v47 = vpack.c.bf16 %v443_v45, %v441_v16  ;;  %v935_v28 = vpack.c.bf16 %v1162_v53, %v1146_v24  ;;  %v591_v22 = vmul.f32 %v443_v45, %v443_v45 }
  0xe9   : > { %v609_v49 = vadd.f32 %v608_v42, %v578_v39  ;;  %v540_v51 = vadd.f32 %v539_v41, %v1106_v40  ;;  %v596_v39 = vmul.f32 %v1132_v55, %v1132_v55 }
  0xea   : > { %947 = vst [vmem:[%s1082_s10 + $0x58] sm:$0xff] %v915_v47  }
  0xeb   : > { %v541_v34 = vadd.f32 %v540_v51, %v1116_v46  ;;  %v610_v56 = vadd.f32 %v609_v49, %v579_v25  ;;  %951 = vst [vmem:[%s1082_s10 + $0x78] sm:$0xff] %v935_v28   ;;  %v598_v49 = vmul.f32 %v1146_v24, %v1146_v24 }
  0xed   : > { %v542_v58 = vadd.f32 %v541_v34, %v1128_v52  ;;  %v611_v59 = vadd.f32 %v610_v56, %v580_v54  ;;  %v586_v52 = vmul.f32 %v1104_v38, %v1104_v38 }
  0xef   : > { %v543_v40 = vadd.f32 %v542_v58, %v421_v3  ;;  %v612_v61 = vadd.f32 %v611_v59, %v581_v57 }
  0xf1   : > { %v613_v62 = vadd.f32 %v612_v61, %v582_v60  ;;  %v544_v0 = vadd.f32 %v543_v40, %v423_v19  ;;  %v590_v19 = vmul.f32 %v441_v16, %v441_v16 }
  0xf3   : > { %v545_v4 = vadd.f32 %v544_v0, %v1075_v26  ;;  %v614_v46 = vadd.f32 %v613_v62, %v583_v1  ;;  %v588_v26 = vmul.f32 %v1126_v50, %v1126_v50 }
  0xf5   : > { %v546_v7 = vadd.f32 %v545_v4, %v1092_v32  ;;  %v615_v8 = vadd.f32 %v614_v46, %v584_v2 }
  0xf7   : > { %v547_v3 = vadd.f32 %v546_v7, %v1104_v38  ;;  %v616_v9 = vadd.f32 %v615_v8, %v585_v5 }
  0xf9   : > { %v617_v11 = vadd.f32 %v616_v9, %v586_v52  ;;  %v548_v12 = vadd.f32 %v547_v3, %v1114_v44  ;;  %v592_v44 = vmul.f32 %v1088_v31, %v1088_v31 }
  0xfb   : > { %v549_v13 = vadd.f32 %v548_v12, %v1126_v50  ;;  %v618_v14 = vadd.f32 %v617_v11, %v587_v10  ;;  %v593_v50 = vmul.f32 %v1098_v36, %v1098_v36 }
  0xfd   : > { %v550_v32 = vadd.f32 %v549_v13, %v1136_v63  ;;  %v619_v17 = vadd.f32 %v618_v14, %v588_v26  ;;  %v594_v63 = vmul.f32 %v1110_v43, %v1110_v43 }
  0xff   : > { %v620_v38 = vadd.f32 %v619_v17, %v589_v15  ;;  %v551_v18 = vadd.f32 %v550_v32, %v441_v16 }
 0x101   : > { %v621_v20 = vadd.f32 %v620_v38, %v590_v19  ;;  %v552_v21 = vadd.f32 %v551_v18, %v443_v45  ;;  %v597_v45 = vmul.f32 %v1140_v6, %v1140_v6 }
 0x103   : > { %v553_v23 = vadd.f32 %v552_v21, %v1088_v31  ;;  %v622_v27 = vadd.f32 %v621_v20, %v591_v22 }
 0x105   : > { %v554_v29 = vadd.f32 %v553_v23, %v1098_v36  ;;  %v623_v30 = vadd.f32 %v622_v27, %v592_v44 }
 0x107   : > { %v555_v16 = vadd.f32 %v554_v29, %v1110_v43  ;;  %v624_v33 = vadd.f32 %v623_v30, %v593_v50 }
 0x109   : > { %v625_v37 = vadd.f32 %v624_v33, %v594_v63  ;;  %v556_v31 = vadd.f32 %v555_v16, %v1120_v48 }
 0x10b   : > { %v557_v36 = vadd.f32 %v556_v31, %v1132_v55  ;;  %v626_v41 = vadd.f32 %v625_v37, %v595_v35  ;;  %v599_v55 = vmul.f32 %v1162_v53, %v1162_v53 }
 0x10d   : > { %v558_v42 = vadd.f32 %v557_v36, %v1140_v6  ;;  %v627_v43 = vadd.f32 %v626_v41, %v596_v39 }
 0x10f   : > { %v628_v47 = vadd.f32 %v627_v43, %v597_v45  ;;  %v559_v25 = vadd.f32 %v558_v42, %v1146_v24 }
 0x111   : > { %v629_v48 = vadd.f32 %v628_v47, %v598_v49  ;;  %v560_v51 = vadd.f32 %v559_v25, %v1162_v53 }
 0x113   : > { %v561_v28 = vrot.slane %v560_v51, 4  ;;  %v630_v54 = vadd.f32 %v629_v48, %v599_v55 }
 0x115   : > { %v562_v34 = vadd.f32 %v561_v28, %v560_v51  ;;  %v631_v56 = vrot.slane %v630_v54, 4 }
 0x117   : > { %v563_v6 = vrot.slane %v562_v34, 2  ;;  %v632_v57 = vadd.f32 %v631_v56, %v630_v54 }
 0x119   : > { %v564_v58 = vadd.f32 %v563_v6, %v562_v34  ;;  %v633_v59 = vrot.slane %v632_v57, 2 }
 0x11b   : > { %v565_v40 = vrot.slane %v564_v58, 1  ;;  %v634_v60 = vadd.f32 %v633_v59, %v632_v57 }
 0x11d   : > { %v566_v24 = vadd.f32 %v565_v40, %v564_v58  ;;  %v635_v61 = vrot.slane %v634_v60, 1 }
 0x11f   : > { %567 = vst [vmem:[%s184_s16] sm:$0x1] %v566_v24  ;;  %v636_v53 = vadd.f32 %v635_v61, %v634_v60 }
 0x121   : > { %637 = vst [vmem:[%s184_s16 + $0x1] sm:$0x1] %v636_v53 }
 0x122 PF: > { %s14_s12 = sadd.s32 1, %s990_s12  }
 0x123   : > { %p11_p5 = scmp.ge.s32.totalorder %s14_s12, 4  }
 0x125   :  { %13 = sbr.rel (!%p11_p5) target bundleno = 1 (0x1), region = 70 }

// kernel: apply_node_func.4
= control target key start
LH: loop header
LB: loop body
LE: loop exit
PB: predicated region body
PF: predicated region fallthrough
CT: control target
= control target key end

     0   :  { %s1343_s18 = smov 0   ;;  %s1645_s0 = inlined_call_operand.vmem [shape: bf16[512,128], index: 0, kind: input, shape index: {}]   ;;  %s1646_s1 = inlined_call_operand.vmem [shape: f32[1,128], index: 1, kind: input, shape index: {}]   ;;  %s1647_s2 = inlined_call_operand.vmem [shape: f32[1,128], index: 2, kind: input, shape index: {}]   ;;  %s1648_s3 = inlined_call_operand.vmem [shape: bf16[128,128], index: 3, kind: input, shape index: {}]   ;;  %s1649_s4 = inlined_call_operand.vmem [shape: bf16[512,128], index: 4, kind: output, shape index: {0}]   ;;  %s1650_s5 = inlined_call_operand.vmem [shape: f32[16,128], index: 5, kind: output, shape index: {1}]  }
   0x1 LB: > { %s1349_s19 = sadd.s32 4294967295, %s1311_s18   ;;  %p1048_p0 = scmp.ge.s32.totalorder %s1311_s18, 1  ;;  %s1311_s18 = sphi %s1343_s18, %s16_s18  }
   0x2   : > { %p191_p1 = scmp.lt.s32.totalorder %s1311_s18, 3 }
   0x4   : > { %p192_p2 = pnand %p1048_p0, %p191_p1 }
   0x5   : > { %s1049_s22 = sshll.u32 (!%p192_p2), %s1349_s19, 5  ;;  %p235_p4 = scmp.lt.s32.totalorder (!%p192_p2), %s1349_s19, 1 }
   0x6   : > { %195 = sbr.rel (%p192_p2) target bundleno = 315 (0x13b), region = 36  ;;  %p224_p3 = scmp.lt.s32.totalorder (!%p192_p2), %s1049_s22, 63 }
   0x7   : > { %p1086_p5 = scmp.ne.s32.totalorder (!%p192_p2), %s1349_s19, 1 }
   0xb   : > { %v1096_v0 = vld [vmem:[%s1648_s3 + $0x38] sm:$0xff]  ;;  %v1095_v1 = vld [vmem:[%s1648_s3 + $0x30] sm:$0xff]  ;;  %s1652_s22 = smov (!%p224_p3, %s1049_s22), 63  ;;  %v1094_v2 = vld [vmem:[%s1648_s3 + $0x28] sm:$0xff] }
   0xc   : > { %487 = vmatpush.bf16.msra.mxu0 %v1096_v0  ;;  %1271 = vmatpush.bf16.msra.mxu1 %v1096_v0  ;;  %s1050_s25 = sshll.u32 %s1652_s22, 2  ;;  %v1093_v4 = vld [vmem:[%s1648_s3 + $0x20] sm:$0xff]  ;;  %v1092_v12 = vld [vmem:[%s1648_s3 + $0x18] sm:$0xff]  ;;  %v1091_v20 = vld [vmem:[%s1648_s3 + $0x10] sm:$0xff] }
   0xd   : > { %1272 = vmatpush.bf16.msra.mxu2 %v1096_v0  ;;  %1273 = vmatpush.bf16.msra.mxu3 %v1096_v0  ;;  %s1371_s30 = scalar_lea.vmem %s1645_s0, %s1050_s25  ;;  %v1382_v9 = vld [vmem:[%s1646_s1] ss:$0 sm:$0xff]  ;;  %v1090_v27 = vld [vmem:[%s1648_s3 + $0x8] sm:$0xff]  ;;  %s1487_s26 = scalar_lea.vmem %s1649_s4, %s1050_s25 }
   0xe   : > { %v1098_v3 = vld [vmem:[%s1371_s30] sm:$0xff]   ;;  %v1241_v32 = vld [vmem:[%s1371_s30 + $0x8] sm:$0xff]   ;;  %s236_s22 = scalar_select %p235_p4, %s1349_s19, 1 }
   0xf   : > { %v1244_v5 = vld [vmem:[%s1371_s30 + $0x20] sm:$0xff]   ;;  %v1099_v7 = vunpack.c.l.bf16 %v1098_v3  ;;  %v1100_v8 = vunpack.c.h.bf16 %v1098_v3  ;;  %v1245_v36 = vld [vmem:[%s1371_s30 + $0x28] sm:$0xff]   ;;  %v1103_v42 = vunpack.c.l.bf16 %v1241_v32  ;;  %v1104_v45 = vunpack.c.h.bf16 %v1241_v32 }
  0x10   : > { %488 = vmatpush.bf16.msra.mxu0 %v1095_v1  ;;  %1274 = vmatpush.bf16.msra.mxu1 %v1095_v1  ;;  %v1248_v6 = vld [vmem:[%s1371_s30 + $0x40] sm:$0xff]   ;;  %v1115_v10 = vunpack.c.l.bf16 %v1244_v5  ;;  %v1116_v11 = vunpack.c.h.bf16 %v1244_v5  ;;  %v1249_v43 = vld [vmem:[%s1371_s30 + $0x48] sm:$0xff]   ;;  %v1119_v46 = vunpack.c.l.bf16 %v1245_v36  ;;  %v1120_v47 = vunpack.c.h.bf16 %v1245_v36  ;;  %s1053_s25 = sshll.u32 %s236_s22, 3 }
  0x11   : > { %1275 = vmatpush.bf16.msra.mxu2 %v1095_v1  ;;  %1276 = vmatpush.bf16.msra.mxu3 %v1095_v1  ;;  %v1131_v13 = vunpack.c.l.bf16 %v1248_v6  ;;  %v1132_v14 = vunpack.c.h.bf16 %v1248_v6  ;;  %v307_v15 = vmul.f32 %v1382_v9, %v1099_v7  ;;  %v308_v16 = vmul.f32 %v1382_v9, %v1100_v8  ;;  %v1392_v17 = vld [vmem:[%s1647_s2] ss:$0 sm:$0xff]  ;;  %s238_s29 = scalar_lea.vmem %s1650_s5, %s1053_s25 }
  0x12   : > { %v315_v18 = vmul.f32 %v1382_v9, %v1115_v10  ;;  %v316_v19 = vmul.f32 %v1382_v9, %v1116_v11  ;;  %v1252_v33 = vld [vmem:[%s1371_s30 + $0x60] sm:$0xff]   ;;  %v1135_v53 = vunpack.c.l.bf16 %v1249_v43  ;;  %v1136_v54 = vunpack.c.h.bf16 %v1249_v43  ;;  %v1254_v43 = vld [vmem:[%s1371_s30 + $0x70] sm:$0xff]  }
  0x13   : > { %v323_v21 = vmul.f32 %v1382_v9, %v1131_v13  ;;  %v324_v22 = vmul.f32 %v1382_v9, %v1132_v14  ;;  %v343_v23 = vadd.f32 %v1392_v17, %v307_v15  ;;  %v344_v24 = vadd.f32 %v1392_v17, %v308_v16  ;;  %v1089_v39 = vld [vmem:[%s1648_s3] sm:$0xff]  ;;  %v1242_v13 = vld [vmem:[%s1371_s30 + $0x10] sm:$0xff]  }
  0x14   : > { %489 = vmatpush.bf16.msra.mxu0 %v1094_v2  ;;  %1277 = vmatpush.bf16.msra.mxu1 %v1094_v2  ;;  %v351_v25 = vadd.f32 %v1392_v17, %v315_v18  ;;  %v352_v26 = vadd.f32 %v1392_v17, %v316_v19  ;;  %v1147_v37 = vunpack.c.l.bf16 %v1252_v33  ;;  %v1148_v38 = vunpack.c.h.bf16 %v1252_v33  ;;  %v1246_v19 = vld [vmem:[%s1371_s30 + $0x30] sm:$0xff]  }
  0x15   : > { %1278 = vmatpush.bf16.msra.mxu2 %v1094_v2  ;;  %1279 = vmatpush.bf16.msra.mxu3 %v1094_v2  ;;  %v359_v28 = vadd.f32 %v1392_v17, %v323_v21  ;;  %v360_v29 = vadd.f32 %v1392_v17, %v324_v22  ;;  %v375_v30 = vmax.f32 %v343_v23, 0.0  ;;  %v376_v31 = vmax.f32 %v344_v24, 0.0 }
  0x16   : > { %v383_v34 = vmax.f32 %v351_v25, 0.0  ;;  %v384_v35 = vmax.f32 %v352_v26, 0.0  ;;  %v331_v44 = vmul.f32 %v1382_v9, %v1147_v37  ;;  %v332_v48 = vmul.f32 %v1382_v9, %v1148_v38 }
  0x17   : > { %v391_v40 = vmax.f32 %v359_v28, 0.0  ;;  %v392_v41 = vmax.f32 %v360_v29, 0.0  ;;  %v407_v49 = vpack.c.bf16 %v376_v31, %v375_v30  ;;  %v309_v56 = vmul.f32 %v1382_v9, %v1103_v42 }
  0x18   : > { %490 = vmatpush.bf16.msra.mxu0 %v1093_v4  ;;  %1280 = vmatpush.bf16.msra.mxu1 %v1093_v4  ;;  %v411_v50 = vpack.c.bf16 %v384_v35, %v383_v34  ;;  %v367_v51 = vadd.f32 %v1392_v17, %v331_v44  ;;  %v368_v55 = vadd.f32 %v1392_v17, %v332_v48  ;;  %v1107_v25 = vunpack.c.l.bf16 %v1242_v13 }
  0x19   : > { %1281 = vmatpush.bf16.msra.mxu2 %v1093_v4  ;;  %1282 = vmatpush.bf16.msra.mxu3 %v1093_v4  ;;  %v415_v52 = vpack.c.bf16 %v392_v41, %v391_v40  ;;  %v310_v58 = vmul.f32 %v1382_v9, %v1104_v45  ;;  %v317_v59 = vmul.f32 %v1382_v9, %v1119_v46  ;;  %v1108_v26 = vunpack.c.h.bf16 %v1242_v13 }
  0x1a   : > { %v399_v57 = vmax.f32 %v367_v51, 0.0  ;;  %v318_v60 = vmul.f32 %v1382_v9, %v1120_v47  ;;  %v400_v61 = vmax.f32 %v368_v55, 0.0  ;;  %v325_v62 = vmul.f32 %v1382_v9, %v1135_v53 }
  0x1b   : > { %v326_v63 = vmul.f32 %v1382_v9, %v1136_v54  ;;  %v345_v1 = vadd.f32 %v1392_v17, %v309_v56  ;;  %v346_v2 = vadd.f32 %v1392_v17, %v310_v58  ;;  %v353_v3 = vadd.f32 %v1392_v17, %v317_v59 }
  0x1c   : > { %491 = vmatpush.bf16.msra.mxu0 %v1092_v12  ;;  %1283 = vmatpush.bf16.msra.mxu1 %v1092_v12  ;;  %v419_v0 = vpack.c.bf16 %v400_v61, %v399_v57  ;;  %v354_v4 = vadd.f32 %v1392_v17, %v318_v60  ;;  %v361_v5 = vadd.f32 %v1392_v17, %v325_v62  ;;  %v1124_v28 = vunpack.c.h.bf16 %v1246_v19  ;;  %v1243_v60 = vld [vmem:[%s1371_s30 + $0x18] sm:$0xff]  }
  0x1d   : > { %1284 = vmatpush.bf16.msra.mxu2 %v1092_v12  ;;  %1285 = vmatpush.bf16.msra.mxu3 %v1092_v12  ;;  %v362_v6 = vadd.f32 %v1392_v17, %v326_v63  ;;  %v377_v7 = vmax.f32 %v345_v1, 0.0  ;;  %v378_v8 = vmax.f32 %v346_v2, 0.0  ;;  %v385_v10 = vmax.f32 %v353_v3, 0.0  ;;  %v1253_v12 = vld [vmem:[%s1371_s30 + $0x68] sm:$0xff]   ;;  %v1247_v63 = vld [vmem:[%s1371_s30 + $0x38] sm:$0xff]  }
  0x1e   : > { %v386_v11 = vmax.f32 %v354_v4, 0.0  ;;  %v1151_v14 = vunpack.c.l.bf16 %v1253_v12  ;;  %v1152_v15 = vunpack.c.h.bf16 %v1253_v12  ;;  %v393_v16 = vmax.f32 %v361_v5, 0.0 }
  0x1f   : > { %v394_v18 = vmax.f32 %v362_v6, 0.0  ;;  %v408_v23 = vpack.c.bf16 %v378_v8, %v377_v7  ;;  %v311_v36 = vmul.f32 %v1382_v9, %v1107_v25  ;;  %v312_v37 = vmul.f32 %v1382_v9, %v1108_v26 }
  0x20   : > { %492 = vmatpush.bf16.msra.mxu0 %v1091_v20  ;;  %1286 = vmatpush.bf16.msra.mxu1 %v1091_v20  ;;  %v333_v21 = vmul.f32 %v1382_v9, %v1151_v14  ;;  %v334_v22 = vmul.f32 %v1382_v9, %v1152_v15  ;;  %v412_v24 = vpack.c.bf16 %v386_v11, %v385_v10  ;;  %v1155_v44 = vunpack.c.l.bf16 %v1254_v43  ;;  %v1255_v10 = vld [vmem:[%s1371_s30 + $0x78] sm:$0xff]  }
  0x21   : > { %1287 = vmatpush.bf16.msra.mxu2 %v1091_v20  ;;  %1288 = vmatpush.bf16.msra.mxu3 %v1091_v20  ;;  %v1250_v20 = vld [vmem:[%s1371_s30 + $0x50] sm:$0xff]   ;;  %v416_v31 = vpack.c.bf16 %v394_v18, %v393_v16  ;;  %v1156_v45 = vunpack.c.h.bf16 %v1254_v43  ;;  %v347_v46 = vadd.f32 %v1392_v17, %v311_v36  ;;  %v348_v47 = vadd.f32 %v1392_v17, %v312_v37 }
  0x22   : > { %v369_v29 = vadd.f32 %v1392_v17, %v333_v21  ;;  %v370_v30 = vadd.f32 %v1392_v17, %v334_v22  ;;  %v1139_v32 = vunpack.c.l.bf16 %v1250_v20  ;;  %v1140_v33 = vunpack.c.h.bf16 %v1250_v20 }
  0x23   : > { %v336_v51 = vmul.f32 %v1382_v9, %v1156_v45  ;;  %v379_v54 = vmax.f32 %v347_v46, 0.0  ;;  %v380_v55 = vmax.f32 %v348_v47, 0.0  ;;  %v1111_v2 = vunpack.c.l.bf16 %v1243_v60 }
  0x24   : > { %493 = vmatpush.bf16.msra.mxu0 %v1090_v27  ;;  %1289 = vmatpush.bf16.msra.mxu1 %v1090_v27  ;;  %v401_v34 = vmax.f32 %v369_v29, 0.0  ;;  %v402_v35 = vmax.f32 %v370_v30, 0.0  ;;  %v327_v41 = vmul.f32 %v1382_v9, %v1139_v32  ;;  %v328_v42 = vmul.f32 %v1382_v9, %v1140_v33 }
  0x25   : > { %1290 = vmatpush.bf16.msra.mxu2 %v1090_v27  ;;  %1291 = vmatpush.bf16.msra.mxu3 %v1090_v27  ;;  %v1123_v27 = vunpack.c.l.bf16 %v1246_v19  ;;  %v372_v57 = vadd.f32 %v1392_v17, %v336_v51  ;;  %v409_v1 = vpack.c.bf16 %v380_v55, %v379_v54  ;;  %v1112_v6 = vunpack.c.h.bf16 %v1243_v60 }
  0x26   : > { %v420_v40 = vpack.c.bf16 %v402_v35, %v401_v34  ;;  %v364_v53 = vadd.f32 %v1392_v17, %v328_v42  ;;  %v1127_v7 = vunpack.c.l.bf16 %v1247_v63  ;;  %v1128_v8 = vunpack.c.h.bf16 %v1247_v63 }
  0x27   : > { %v319_v38 = vmul.f32 %v1382_v9, %v1123_v27  ;;  %v404_v4 = vmax.f32 %v372_v57, 0.0  ;;  %v313_v14 = vmul.f32 %v1382_v9, %v1111_v2  ;;  %v1159_v16 = vunpack.c.l.bf16 %v1255_v10 }
  0x28   : > { %494 = vmatpush.bf16.msra.mxu0 %v1089_v39  ;;  %1292 = vmatpush.bf16.msra.mxu1 %v1089_v39  ;;  %v396_v62 = vmax.f32 %v364_v53, 0.0  ;;  %v1160_v18 = vunpack.c.h.bf16 %v1255_v10  ;;  %v314_v19 = vmul.f32 %v1382_v9, %v1112_v6  ;;  %v321_v20 = vmul.f32 %v1382_v9, %v1127_v7 }
  0x29   : > { %1293 = vmatpush.bf16.msra.mxu2 %v1089_v39  ;;  %1294 = vmatpush.bf16.msra.mxu3 %v1089_v39  ;;  %v320_v39 = vmul.f32 %v1382_v9, %v1124_v28  ;;  %v355_v48 = vadd.f32 %v1392_v17, %v319_v38  ;;  %v322_v21 = vmul.f32 %v1382_v9, %v1128_v8 }
  0x2a   : > { %v338_v25 = vmul.f32 %v1382_v9, %v1160_v18  ;;  %v349_v26 = vadd.f32 %v1392_v17, %v313_v14  ;;  %v350_v27 = vadd.f32 %v1392_v17, %v314_v19  ;;  %v357_v28 = vadd.f32 %v1392_v17, %v321_v20 }
  0x2b   : > { %495 = vmatmul.bf16.vlgmr.msra.gmra.mxu0 %v407_v49  ;;  %515 = vmatmul.bf16.vlgmr.msra.gmra.mxu1 %v411_v50  ;;  %v356_v49 = vadd.f32 %v1392_v17, %v320_v39  ;;  %v335_v50 = vmul.f32 %v1382_v9, %v1155_v44  ;;  %v387_v58 = vmax.f32 %v355_v48, 0.0  ;;  %v358_v29 = vadd.f32 %v1392_v17, %v322_v21 }
  0x2c   : > { %535 = vmatmul.bf16.vlgmr.msra.gmra.mxu2 %v415_v52  ;;  %555 = vmatmul.bf16.vlgmr.msra.gmra.mxu3 %v419_v0  ;;  %v363_v52 = vadd.f32 %v1392_v17, %v327_v41  ;;  %v1251_v0 = vld [vmem:[%s1371_s30 + $0x58] sm:$0xff]   ;;  %v374_v33 = vadd.f32 %v1392_v17, %v338_v25  ;;  %v381_v34 = vmax.f32 %v349_v26, 0.0  ;;  %v382_v35 = vmax.f32 %v350_v27, 0.0 }
  0x2d   : > { %v371_v56 = vadd.f32 %v1392_v17, %v335_v50  ;;  %v388_v59 = vmax.f32 %v356_v49, 0.0  ;;  %v1143_v12 = vunpack.c.l.bf16 %v1251_v0  ;;  %v1144_v13 = vunpack.c.h.bf16 %v1251_v0 }
  0x2e   : > { %v395_v61 = vmax.f32 %v363_v52, 0.0  ;;  %v389_v36 = vmax.f32 %v357_v28, 0.0  ;;  %v410_v41 = vpack.c.bf16 %v382_v35, %v381_v34 }
  0x2f   : > { %v403_v3 = vmax.f32 %v371_v56, 0.0  ;;  %v413_v5 = vpack.c.bf16 %v388_v59, %v387_v58  ;;  %v329_v22 = vmul.f32 %v1382_v9, %v1143_v12 }
  0x30   : > { %v417_v11 = vpack.c.bf16 %v396_v62, %v395_v61 }
  0x31   : > { %v421_v15 = vpack.c.bf16 %v404_v4, %v403_v3  ;;  %v365_v30 = vadd.f32 %v1392_v17, %v329_v22 }
  0x33   : > { %v397_v37 = vmax.f32 %v365_v30, 0.0 }
  0x3b   : > { %500 = vmatmul.bf16.gmra.mxu0 %v408_v23  ;;  %520 = vmatmul.bf16.gmra.mxu1 %v412_v24  ;;  %v330_v23 = vmul.f32 %v1382_v9, %v1144_v13  ;;  %v337_v24 = vmul.f32 %v1382_v9, %v1159_v16  ;;  %v390_v9 = vmax.f32 %v358_v29, 0.0 }
  0x3c   : > { %540 = vmatmul.bf16.gmra.mxu2 %v416_v31  ;;  %560 = vmatmul.bf16.gmra.mxu3 %v420_v40  ;;  %v406_v40 = vmax.f32 %v374_v33, 0.0 }
  0x3d   : > { %v366_v31 = vadd.f32 %v1392_v17, %v330_v23  ;;  %v373_v32 = vadd.f32 %v1392_v17, %v337_v24  ;;  %v414_v42 = vpack.c.bf16 %v390_v9, %v389_v36 }
  0x3f   : > { %v398_v38 = vmax.f32 %v366_v31, 0.0  ;;  %v405_v39 = vmax.f32 %v373_v32, 0.0 }
  0x41   : > { %v418_v43 = vpack.c.bf16 %v398_v38, %v397_v37  ;;  %v422_v44 = vpack.c.bf16 %v406_v40, %v405_v39 }
  0x4b   : > { %505 = vmatmul.bf16.gmra.mxu0 %v409_v1  ;;  %525 = vmatmul.bf16.gmra.mxu1 %v413_v5 }
  0x4c   : > { %545 = vmatmul.bf16.gmra.mxu2 %v417_v11  ;;  %565 = vmatmul.bf16.gmra.mxu3 %v421_v15 }
  0x5b   : > { %510 = vmatmul.bf16.gmra.mxu0 %v410_v41  ;;  %530 = vmatmul.bf16.gmra.mxu1 %v414_v42 }
  0x5c   : > { %550 = vmatmul.bf16.gmra.mxu2 %v418_v43  ;;  %570 = vmatmul.bf16.gmra.mxu3 %v422_v44 }
  0xa8   : > { %v496_v45 = vpop.f32.mrf.mxu0  ;;  %v1478_v46 = vpop.f32.mrf.mxu1 }
  0xa9   : > { %v678_v14 = vmul.f32 %v496_v45, %v496_v45 }
  0xaf   : > { %v1480_v17 = vpop.f32.mrf.mxu2  ;;  %v1493_v51 = vpop.f32.mrf.mxu3 }
  0xb0   : > { %v498_v47 = vpop.f32.mrf.mxu0  ;;  %v1489_v48 = vpop.f32.mrf.mxu1 }
  0xb1   : > { %v1164_v49 = vpack.c.bf16 %v498_v47, %v496_v45  ;;  %v1184_v50 = vpack.c.bf16 %v1489_v48, %v1478_v46  ;;  %v679_v13 = vmul.f32 %v498_v47, %v498_v47  ;;  %v640_v16 = vadd.f32 %v498_v47, %v496_v45 }
  0xb2   : > { %v686_v47 = vmul.f32 %v1478_v46, %v1478_v46 }
  0xb3   : > { %1165 = vst [vmem:[%s1487_s26] sm:$0xff] %v1164_v49   ;;  %v710_v18 = vadd.f32 %v679_v13, %v678_v14 }
  0xb4   : > { %1259 = vst [vmem:[%s1487_s26 + $0x20] sm:$0xff] %v1184_v50  }
  0xb7   : > { %v1497_v52 = vpop.f32.mrf.mxu2  ;;  %v1503_v56 = vpop.f32.mrf.mxu3 }
  0xb8   : > { %v501_v53 = vpop.f32.mrf.mxu0  ;;  %v1499_v54 = vpop.f32.mrf.mxu1  ;;  %v1204_v55 = vpack.c.bf16 %v1497_v52, %v1480_v17  ;;  %v1224_v57 = vpack.c.bf16 %v1503_v56, %v1493_v51 }
  0xb9   : > { %v680_v15 = vmul.f32 %v501_v53, %v501_v53  ;;  %v641_v20 = vadd.f32 %v640_v16, %v501_v53 }
  0xba   : > { %1263 = vst [vmem:[%s1487_s26 + $0x40] sm:$0xff] %v1204_v55  }
  0xbb   : > { %1267 = vst [vmem:[%s1487_s26 + $0x60] sm:$0xff] %v1224_v57   ;;  %v711_v22 = vadd.f32 %v710_v18, %v680_v15 }
  0xbf   : > { %v1509_v58 = vpop.f32.mrf.mxu2  ;;  %v1515_v63 = vpop.f32.mrf.mxu3 }
  0xc0   : > { %v503_v59 = vpop.f32.mrf.mxu0  ;;  %v1511_v60 = vpop.f32.mrf.mxu1 }
  0xc1   : > { %v1169_v61 = vpack.c.bf16 %v503_v59, %v501_v53  ;;  %v1189_v62 = vpack.c.bf16 %v1511_v60, %v1499_v54  ;;  %v681_v19 = vmul.f32 %v503_v59, %v503_v59  ;;  %v642_v27 = vadd.f32 %v641_v20, %v503_v59 }
  0xc2   : > { %v687_v53 = vmul.f32 %v1489_v48, %v1489_v48  ;;  %v688_v59 = vmul.f32 %v1499_v54, %v1499_v54 }
  0xc3   : > { %1256 = vst [vmem:[%s1487_s26 + $0x8] sm:$0xff] %v1169_v61   ;;  %v712_v29 = vadd.f32 %v711_v22, %v681_v19 }
  0xc4   : > { %1260 = vst [vmem:[%s1487_s26 + $0x28] sm:$0xff] %v1189_v62  }
  0xc7   : > { %v1519_v0 = vpop.f32.mrf.mxu2  ;;  %v1525_v4 = vpop.f32.mrf.mxu3 }
  0xc8   : > { %v506_v1 = vpop.f32.mrf.mxu0  ;;  %v1521_v2 = vpop.f32.mrf.mxu1  ;;  %v1209_v3 = vpack.c.bf16 %v1519_v0, %v1509_v58  ;;  %v1229_v5 = vpack.c.bf16 %v1525_v4, %v1515_v63 }
  0xc9   : > { %v682_v23 = vmul.f32 %v506_v1, %v506_v1  ;;  %v1555_v32 = vadd.f32 %v642_v27, %v506_v1  ;;  %v690_v13 = vmul.f32 %v1521_v2, %v1521_v2 }
  0xca   : > { %1264 = vst [vmem:[%s1487_s26 + $0x48] sm:$0xff] %v1209_v3  }
  0xcb   : > { %1268 = vst [vmem:[%s1487_s26 + $0x68] sm:$0xff] %v1229_v5   ;;  %v1557_v33 = vadd.f32 %v712_v29, %v682_v23  ;;  %v695_v29 = vmul.f32 %v1497_v52, %v1497_v52 }
  0xcf   : > { %v1531_v6 = vpop.f32.mrf.mxu2  ;;  %v1540_v12 = vpop.f32.mrf.mxu3 }
  0xd0   : > { %v1533_v7 = vpop.f32.mrf.mxu0  ;;  %v1535_v8 = vpop.f32.mrf.mxu1 }
  0xd1   : > { %v1174_v10 = vpack.c.bf16 %v1533_v7, %v506_v1  ;;  %v1194_v11 = vpack.c.bf16 %v1535_v8, %v1521_v2  ;;  %v683_v30 = vmul.f32 %v1533_v7, %v1533_v7  ;;  %v644_v35 = vadd.f32 %v1555_v32, %v1533_v7 }
  0xd2   : > { %v691_v15 = vmul.f32 %v1535_v8, %v1535_v8 }
  0xd3   : > { %1257 = vst [vmem:[%s1487_s26 + $0x10] sm:$0xff] %v1174_v10   ;;  %v714_v36 = vadd.f32 %v1557_v33, %v683_v30 }
  0xd4   : > { %1261 = vst [vmem:[%s1487_s26 + $0x30] sm:$0xff] %v1194_v11  }
  0xd7   : > { %v1544_v21 = vpop.f32.mrf.mxu2  ;;  %v1548_v28 = vpop.f32.mrf.mxu3 }
  0xd8   : > { %v511_v24 = vpop.f32.mrf.mxu0  ;;  %v531_v25 = vpop.f32.mrf.mxu1  ;;  %v1214_v26 = vpack.c.bf16 %v1544_v21, %v1531_v6  ;;  %v1234_v31 = vpack.c.bf16 %v1548_v28, %v1540_v12 }
  0xd9   : > { %v684_v34 = vmul.f32 %v511_v24, %v511_v24  ;;  %v645_v9 = vadd.f32 %v644_v35, %v511_v24  ;;  %v692_v19 = vmul.f32 %v531_v25, %v531_v25  ;;  %v697_v35 = vmul.f32 %v1519_v0, %v1519_v0 }
  0xda   : > { %1265 = vst [vmem:[%s1487_s26 + $0x50] sm:$0xff] %v1214_v26   ;;  %v694_v26 = vmul.f32 %v1480_v17, %v1480_v17 }
  0xdb   : > { %1269 = vst [vmem:[%s1487_s26 + $0x70] sm:$0xff] %v1234_v31   ;;  %v715_v38 = vadd.f32 %v714_v36, %v684_v34 }
  0xdf   : > { %v551_v37 = vpop.f32.mrf.mxu2  ;;  %v1563_v45 = vpop.f32.mrf.mxu3 }
  0xe0   : > { %v513_v39 = vpop.f32.mrf.mxu0  ;;  %v533_v40 = vpop.f32.mrf.mxu1 }
  0xe1   : > { %v1179_v41 = vpack.c.bf16 %v513_v39, %v511_v24  ;;  %v646_v42 = vadd.f32 %v645_v9, %v513_v39  ;;  %v685_v43 = vmul.f32 %v513_v39, %v513_v39  ;;  %v1199_v44 = vpack.c.bf16 %v533_v40, %v531_v25 }
  0xe2   : > { %v693_v24 = vmul.f32 %v533_v40, %v533_v40 }
  0xe3   : > { %1258 = vst [vmem:[%s1487_s26 + $0x18] sm:$0xff] %v1179_v41   ;;  %v647_v49 = vadd.f32 %v646_v42, %v1478_v46  ;;  %v716_v50 = vadd.f32 %v715_v38, %v685_v43  ;;  %v689_v46 = vmul.f32 %v1511_v60, %v1511_v60  ;;  %v700_v43 = vmul.f32 %v551_v37, %v551_v37 }
  0xe4   : > { %1262 = vst [vmem:[%s1487_s26 + $0x38] sm:$0xff] %v1199_v44  }
  0xe5   : > { %v648_v55 = vadd.f32 %v647_v49, %v1489_v48  ;;  %v717_v57 = vadd.f32 %v716_v50, %v686_v47 }
  0xe7   : > { %v649_v61 = vadd.f32 %v648_v55, %v1499_v54  ;;  %v718_v62 = vadd.f32 %v717_v57, %v687_v53  ;;  %v553_v1 = vpop.f32.mrf.mxu2  ;;  %v1579_v11 = vpop.f32.mrf.mxu3 }
  0xe8   : > { %v1219_v3 = vpack.c.bf16 %v553_v1, %v551_v37  ;;  %v1239_v48 = vpack.c.bf16 %v1579_v11, %v1563_v45  ;;  %v701_v49 = vmul.f32 %v553_v1, %v553_v1 }
  0xe9   : > { %v719_v5 = vadd.f32 %v718_v62, %v688_v59  ;;  %v650_v10 = vadd.f32 %v649_v61, %v1511_v60  ;;  %v705_v61 = vmul.f32 %v1525_v4, %v1525_v4 }
  0xea   : > { %1266 = vst [vmem:[%s1487_s26 + $0x58] sm:$0xff] %v1219_v3  }
  0xeb   : > { %v651_v54 = vadd.f32 %v650_v10, %v1521_v2  ;;  %v720_v14 = vadd.f32 %v719_v5, %v689_v46  ;;  %1270 = vst [vmem:[%s1487_s26 + $0x78] sm:$0xff] %v1239_v48   ;;  %v707_v5 = vmul.f32 %v1548_v28, %v1548_v28 }
  0xed   : > { %v652_v16 = vadd.f32 %v651_v54, %v1535_v8  ;;  %v721_v18 = vadd.f32 %v720_v14, %v690_v13  ;;  %v696_v8 = vmul.f32 %v1509_v58, %v1509_v58  ;;  %v708_v13 = vmul.f32 %v1563_v45, %v1563_v45 }
  0xef   : > { %v653_v60 = vadd.f32 %v652_v16, %v531_v25  ;;  %v722_v20 = vadd.f32 %v721_v18, %v691_v15 }
  0xf1   : > { %v723_v22 = vadd.f32 %v722_v20, %v692_v19  ;;  %v654_v23 = vadd.f32 %v653_v60, %v533_v40  ;;  %v699_v40 = vmul.f32 %v1544_v21, %v1544_v21 }
  0xf3   : > { %v655_v27 = vadd.f32 %v654_v23, %v1480_v17  ;;  %v724_v2 = vadd.f32 %v723_v22, %v693_v24  ;;  %v698_v17 = vmul.f32 %v1531_v6, %v1531_v6 }
  0xf5   : > { %v656_v30 = vadd.f32 %v655_v27, %v1497_v52  ;;  %v725_v31 = vadd.f32 %v724_v2, %v694_v26 }
  0xf7   : > { %v657_v25 = vadd.f32 %v656_v30, %v1509_v58  ;;  %v726_v34 = vadd.f32 %v725_v31, %v695_v29 }
  0xf9   : > { %v727_v36 = vadd.f32 %v726_v34, %v696_v8  ;;  %v658_v9 = vadd.f32 %v657_v25, %v1519_v0  ;;  %v702_v0 = vmul.f32 %v1493_v51, %v1493_v51 }
  0xfb   : > { %v659_v38 = vadd.f32 %v658_v9, %v1531_v6  ;;  %v728_v39 = vadd.f32 %v727_v36, %v697_v35  ;;  %v703_v6 = vmul.f32 %v1503_v56, %v1503_v56 }
  0xfd   : > { %v660_v52 = vadd.f32 %v659_v38, %v1544_v21  ;;  %v729_v41 = vadd.f32 %v728_v39, %v698_v17  ;;  %v704_v21 = vmul.f32 %v1515_v63, %v1515_v63 }
  0xff   : > { %v730_v58 = vadd.f32 %v729_v41, %v699_v40  ;;  %v661_v42 = vadd.f32 %v660_v52, %v551_v37 }
 0x101   : > { %v731_v44 = vadd.f32 %v730_v58, %v700_v43  ;;  %v662_v47 = vadd.f32 %v661_v42, %v553_v1  ;;  %v706_v1 = vmul.f32 %v1540_v12, %v1540_v12 }
 0x103   : > { %v663_v50 = vadd.f32 %v662_v47, %v1493_v51  ;;  %v732_v53 = vadd.f32 %v731_v44, %v701_v49 }
 0x105   : > { %v664_v55 = vadd.f32 %v663_v50, %v1503_v56  ;;  %v733_v57 = vadd.f32 %v732_v53, %v702_v0 }
 0x107   : > { %v665_v37 = vadd.f32 %v664_v55, %v1515_v63  ;;  %v734_v59 = vadd.f32 %v733_v57, %v703_v6 }
 0x109   : > { %v735_v62 = vadd.f32 %v734_v59, %v704_v21  ;;  %v666_v51 = vadd.f32 %v665_v37, %v1525_v4 }
 0x10b   : > { %v667_v56 = vadd.f32 %v666_v51, %v1540_v12  ;;  %v736_v3 = vadd.f32 %v735_v62, %v705_v61  ;;  %v709_v12 = vmul.f32 %v1579_v11, %v1579_v11 }
 0x10d   : > { %v668_v46 = vadd.f32 %v667_v56, %v1548_v28  ;;  %v737_v63 = vadd.f32 %v736_v3, %v706_v1 }
 0x10f   : > { %v738_v10 = vadd.f32 %v737_v63, %v707_v5  ;;  %v669_v48 = vadd.f32 %v668_v46, %v1563_v45 }
 0x111   : > { %v739_v4 = vadd.f32 %v738_v10, %v708_v13  ;;  %v670_v54 = vadd.f32 %v669_v48, %v1579_v11 }
 0x113   : > { %v671_v14 = vrot.slane %v670_v54, 4  ;;  %v740_v15 = vadd.f32 %v739_v4, %v709_v12 }
 0x115   : > { %v672_v16 = vadd.f32 %v671_v14, %v670_v54  ;;  %v741_v18 = vrot.slane %v740_v15, 4 }
 0x117   : > { %v673_v28 = vrot.slane %v672_v16, 2  ;;  %v742_v60 = vadd.f32 %v741_v18, %v740_v15 }
 0x119   : > { %v674_v19 = vadd.f32 %v673_v28, %v672_v16  ;;  %v743_v20 = vrot.slane %v742_v60, 2 }
 0x11b   : > { %v675_v22 = vrot.slane %v674_v19, 1  ;;  %v744_v23 = vadd.f32 %v743_v20, %v742_v60 }
 0x11d   : > { %v676_v45 = vadd.f32 %v675_v22, %v674_v19  ;;  %v745_v24 = vrot.slane %v744_v23, 1  ;;  %751 = sbr.rel (%p1086_p5) target bundleno = 315 (0x13b), region = 40 }
 0x11f   : > { %677 = vst [vmem:[%s238_s29] sm:$0x1] %v676_v45  ;;  %v746_v11 = vadd.f32 %v745_v24, %v744_v23 }
 0x121   : > { %747 = vst [vmem:[%s238_s29 + $0x1] sm:$0x1] %v746_v11 }
 0x122   : > { %v752_v26 = vlaneseq }
 0x124   : > { %v753_v27 = vshrl.u32 %v752_v26, 7 }
 0x126   : > { %v758_v2 = vadd.s32 40, %v753_v27 }
 0x128   : > { %vm790_vm0 = vcmp.lt.s32.totalorder %v758_v2, 44 }
 0x129   : > { %v822_v29 = vsel %vm790_vm0, %v1533_v7, 0.0 }
 0x12a   : > { %v853_v30 = vadd.f32 %v822_v29, %v1555_v32  ;;  %v892_v31 = vmul.f32 %v822_v29, %v822_v29 }
 0x12c   : > { %v880_v8 = vrot.slane %v853_v30, 4  ;;  %v923_v25 = vadd.f32 %v892_v31, %v1557_v33 }
 0x12e   : > { %v881_v34 = vadd.f32 %v880_v8, %v853_v30  ;;  %v950_v35 = vrot.slane %v923_v25, 4 }
 0x130   : > { %v882_v36 = vrot.slane %v881_v34, 2  ;;  %v951_v9 = vadd.f32 %v950_v35, %v923_v25 }
 0x132   : > { %v883_v17 = vadd.f32 %v882_v36, %v881_v34  ;;  %v952_v38 = vrot.slane %v951_v9, 2 }
 0x134   : > { %v884_v39 = vrot.slane %v883_v17, 1  ;;  %v953_v52 = vadd.f32 %v952_v38, %v951_v9 }
 0x136   : > { %v885_v40 = vadd.f32 %v884_v39, %v883_v17  ;;  %v954_v41 = vrot.slane %v953_v52, 1 }
 0x138   : > { %886 = vst [vmem:[%s238_s29] sm:$0x1] %v885_v40  ;;  %v955_v58 = vadd.f32 %v954_v41, %v953_v52 }
 0x13a   : > { %956 = vst [vmem:[%s238_s29 + $0x1] sm:$0x1] %v955_v58 }
 0x13b PF: > { %s16_s18 = sadd.s32 1, %s1311_s18  }
 0x13c   : > { %p13_p6 = scmp.ge.s32.totalorder %s16_s18, 4  }
 0x13e   :  { %15 = sbr.rel (!%p13_p6) target bundleno = 1 (0x1), region = 82 }

</bundles_post_ra>
